<compile_context>
chip_gen: v7x
topology: tpu7x:2x2x1
jax: 0.10.0
libtpu: 0.0.40
codegen_flags: <defaults>
</compile_context>

<pallas_src>
import functools

import jax
import jax.numpy as jnp
from jax.experimental import pallas as pl
from jax.experimental.pallas import tpu as pltpu

EPS = 1e-5          # nn.BatchNorm2d default eps
NEG_SLOPE = 0.2     # LeakyReLU slope


# ---------------------------------------------------------------- kernels ----
def _conv_bn_lrelu_kernel(ids_ref, x_ref, w_ref, scale_ref, shift_ref,
                          y_ref, psum_ref, psq_ref, taps_ref,
                          *, height, width, apply_act, dot_dtype, neg_slope):
    """(prev BN + LeakyReLU) -> 3x3 reflect conv for one batch element.

    Layouts (lane dim = flattened spatial H*W, i.e. native NCHW):
      ids_ref   : (2, H*W)  int32       row ids (row 0) / col ids (row 1)
      x_ref     : (Cin, H*W)            raw previous conv output (or module input)
      w_ref     : (Cout, K_pad)         weights, columns = (3*dy+dx)*Cin + ci
      scale_ref : (Cin, 1)  f32         folded BN scale of the previous layer
      shift_ref : (Cin, 1)  f32         folded BN shift of the previous layer
      y_ref     : (Cout, H*W) dot_dtype raw conv output of this layer
      psum_ref  : (Cout, 1) f32         per-batch-element sum   (partial BN stats)
      psq_ref   : (Cout, 1) f32         per-batch-element sumsq (partial BN stats)
      taps_ref  : (K_pad, H*W)          VMEM scratch, taps stacked along K
    """
    cin, hw = x_ref.shape
    H, W = height, width
    k = 9 * cin
    k_pad = taps_ref.shape[0]

    x = x_ref[...].astype(jnp.float32)
    if apply_act:
        # Previous layer's BN + LeakyReLU prologue, f32 VPU math (v5e-safe).
        a = x * scale_ref[...] + shift_ref[...]
        a = jnp.where(a >= 0, a, neg_slope * a)
    else:
        a = x                                   # first layer: raw module input
    a = a.astype(dot_dtype)

    ids = ids_ref[...]
    row = ids[0:1, :]
    col = ids[1:2, :]
    row0 = row == 0
    rowl = row == H - 1
    col0 = col == 0
    coll = col == W - 1

    # Row taps via XLU rolls (wrap-around lanes are exactly the reflect-fixed
    # boundary positions, overwritten by the selects below).
    u_raw = pltpu.roll(a, W, axis=1)              # reads row y-1
    d_raw = pltpu.roll(a, hw - W, axis=1)         # reads row y+1
    r_up = jnp.where(row0, d_raw, u_raw)          # reflect row -1 -> row 1
    r_dn = jnp.where(rowl, u_raw, d_raw)          # reflect row H  -> row H-2

    # Re-zero only the few K-padding rows (scratch persists across grid steps;
    # a program_id==0 one-shot init is unsafe on a "parallel" grid).
    if k_pad > k:
        taps_ref[k:, :] = jnp.zeros((k_pad - k, hw), dot_dtype)

    # Column taps via rolls, stacked along the contraction dim of the scratch.
    for dy, r in enumerate((r_up, a, r_dn)):
        l_raw = pltpu.roll(r, 1, axis=1)           # reads col x-1
        rr_raw = pltpu.roll(r, hw - 1, axis=1)     # reads col x+1
        left = jnp.where(col0, rr_raw, l_raw)      # reflect col -1 -> col 1
        right = jnp.where(coll, l_raw, rr_raw)     # reflect col W  -> col W-2
        for dx, tap in enumerate((left, r, right)):
            t = 3 * dy + dx
            taps_ref[t * cin:(t + 1) * cin, :] = tap

    # One fused MXU dot (K = 9*Cin padded) replaces 9 small dots + 8 VPU adds.
    acc = jnp.dot(w_ref[...], taps_ref[...], preferred_element_type=jnp.float32)

    y_ref[...] = acc.astype(y_ref.dtype)          # lane-dense (Cout, H*W) store
    # Per-batch-element partial BN statistics (reduced across N in the wrapper);
    # no resident accumulator, so the grid axis stays "parallel".
    psum_ref[...] = jnp.sum(acc, axis=1, keepdims=True)
    psq_ref[...] = jnp.sum(acc * acc, axis=1, keepdims=True)


def _bn_lrelu_pool_kernel(y_ref, scale_ref, shift_ref, sel_ref,
                          res_ref, pool_ref, *, height, width, neg_slope):
    """Final BatchNorm + LeakyReLU + residual store + fused 2x2 max-pool."""
    c, hw = y_ref.shape
    W = width

    z = y_ref[...].astype(jnp.float32) * scale_ref[...] + shift_ref[...]
    r = jnp.where(z >= 0, z, neg_slope * z)           # (C, H*W) f32
    res_ref[...] = r                                  # lane-dense residual store

    # 2x2 max-pool: pairwise maxes on the (otherwise idle) XLU/VPU slots via
    # lane rolls; wrap-around lanes only affect odd rows/cols, which are never
    # selected below.
    mc = jnp.maximum(r, pltpu.roll(r, hw - 1, axis=1))    # col-pair max
    mr = jnp.maximum(mc, pltpu.roll(mc, hw - W, axis=1))  # + row-pair max
    # Single 0/1 selection dot (K = H*W) compacts the even-(row,col) lanes.
    # TODO(synk): replace with stride-2 lane reads once minor-dim strided
    # slices lower reliably; this dot is a pure gather.
    pool_ref[...] = jnp.dot(mr, sel_ref[...], preferred_element_type=jnp.float32)


# --------------------------------------------------------------- wrappers ----
def _mosaic_params(block_bytes, scratch_bytes=0):
    """Double-buffered blocks + scratch + slack, clamped to a v7x-safe limit."""
    est = 2 * block_bytes + scratch_bytes + (8 << 20)
    limit = int(min(max(est, 32 << 20), 48 << 20))
    return pltpu.CompilerParams(dimension_semantics=("parallel",),
                                vmem_limit_bytes=limit)


def _prep_weights(w_hwio, k_pad, dot_dtype):
    """HWIO (3,3,Cin,Cout) -> (Cout, K_pad); column = (3*dy+dx)*Cin + ci."""
    kh, kw, cin, cout = w_hwio.shape
    w = jnp.transpose(w_hwio, (3, 0, 1, 2)).reshape(cout, kh * kw * cin)
    if k_pad > kh * kw * cin:
        w = jnp.pad(w, ((0, 0), (0, k_pad - kh * kw * cin)))
    return w.astype(dot_dtype)


def _make_pool_selector(height, width):
    ho_n, wo_n = height // 2, width // 2
    ho, wo = jnp.meshgrid(jnp.arange(ho_n), jnp.arange(wo_n), indexing="ij")
    src = (2 * ho * width + 2 * wo).reshape(-1)
    dst = jnp.arange(ho_n * wo_n)
    sel = jnp.zeros((height * width, ho_n * wo_n), jnp.float32)
    return sel.at[src, dst].set(1.0)


def _conv_bn_lrelu(x, w_flat, scale_prev, shift_prev, ids, *,
                   height, width, apply_act, dot_dtype):
    """One fused (prev BN + LeakyReLU) -> conv3x3(reflect) -> partial-stats layer."""
    n, cin, hw = x.shape
    cout, k_pad = w_flat.shape
    isz = jnp.dtype(dot_dtype).itemsize
    block_bytes = (2 * hw * 4 + cin * hw * x.dtype.itemsize + cout * k_pad * isz
                   + 2 * cin * 4 + cout * hw * isz + 2 * cout * 4)
    scratch_bytes = k_pad * hw * isz
    kern = functools.partial(_conv_bn_lrelu_kernel, height=height, width=width,
                             apply_act=apply_act, dot_dtype=dot_dtype,
                             neg_slope=NEG_SLOPE)
    return pl.pallas_call(
        kern,
        out_shape=(
            jax.ShapeDtypeStruct((n, cout, hw), dot_dtype),   # bf16 inter-layer y
            jax.ShapeDtypeStruct((n, cout, 1), jnp.float32),
            jax.ShapeDtypeStruct((n, cout, 1), jnp.float32),
        ),
        grid=(n,),
        in_specs=[
            pl.BlockSpec((2, hw), lambda i: (0, 0)),                # row/col ids
            pl.BlockSpec((None, cin, hw), lambda i: (i, 0, 0)),     # activation
            pl.BlockSpec((cout, k_pad), lambda i: (0, 0)),          # weights
            pl.BlockSpec((cin, 1), lambda i: (0, 0)),               # prev BN scale
            pl.BlockSpec((cin, 1), lambda i: (0, 0)),               # prev BN shift
        ],
        out_specs=(
            pl.BlockSpec((None, cout, hw), lambda i: (i, 0, 0)),
            pl.BlockSpec((None, cout, 1), lambda i: (i, 0, 0)),
            pl.BlockSpec((None, cout, 1), lambda i: (i, 0, 0)),
        ),
        scratch_shapes=[pltpu.VMEM((k_pad, hw), dot_dtype)],
        compiler_params=_mosaic_params(block_bytes, scratch_bytes),
    )(ids, x, w_flat, scale_prev, shift_prev)


def _bn_lrelu_pool(y, scale, shift, sel, *, height, width):
    n, c, hw = y.shape
    ho, wo = height // 2, width // 2
    block_bytes = (c * hw * y.dtype.itemsize + 2 * c * 4 + hw * ho * wo * 4
                   + c * hw * 4 + c * ho * wo * 4)
    kern = functools.partial(_bn_lrelu_pool_kernel, height=height, width=width,
                             neg_slope=NEG_SLOPE)
    return pl.pallas_call(
        kern,
        out_shape=(
            jax.ShapeDtypeStruct((n, c, hw), jnp.float32),        # residual
            jax.ShapeDtypeStruct((n, c, ho * wo), jnp.float32),   # pooled
        ),
        grid=(n,),
        in_specs=[
            pl.BlockSpec((None, c, hw), lambda i: (i, 0, 0)),
            pl.BlockSpec((c, 1), lambda i: (0, 0)),
            pl.BlockSpec((c, 1), lambda i: (0, 0)),
            pl.BlockSpec((hw, ho * wo), lambda i: (0, 0)),
        ],
        out_specs=(
            pl.BlockSpec((None, c, hw), lambda i: (i, 0, 0)),
            pl.BlockSpec((None, c, ho * wo), lambda i: (i, 0, 0)),
        ),
        compiler_params=_mosaic_params(block_bytes),
    )(y, scale, shift, sel)


def downsample_forward(x_nchw, params, *, dot_dtype=jnp.bfloat16):
    """Equivalent of DownSample.forward. Returns (pooled, residual), both NCHW."""
    n, c0, height, width = x_nchw.shape
    assert height % 2 == 0 and width % 2 == 0, "MaxPool2d(2) assumes even H and W"
    assert height >= 2 and width >= 2, "reflect padding needs H, W >= 2"
    hw = height * width
    count = float(n * hw)

    idx = jnp.arange(hw, dtype=jnp.int32)
    ids = jnp.stack([idx // width, idx % width]).astype(jnp.int32)   # (2, H*W)

    h = x_nchw.reshape(n, c0, hw).astype(jnp.float32)   # NCHW flat == lane-dense

    scale_prev = jnp.ones((c0, 1), jnp.float32)
    shift_prev = jnp.zeros((c0, 1), jnp.float32)
    apply_act = False
    for (w_hwio, gamma, beta) in params:
        cin, cout = w_hwio.shape[2], w_hwio.shape[3]
        k_pad = ((9 * cin + 15) // 16) * 16              # K multiple of 16 (bf16)
        w_flat = _prep_weights(w_hwio, k_pad, dot_dtype)
        y, psum, psq = _conv_bn_lrelu(
            h, w_flat, scale_prev, shift_prev, ids,
            height=height, width=width, apply_act=apply_act, dot_dtype=dot_dtype)
        # Training-mode BatchNorm batch stats (biased variance), folded into a
        # scale/shift that the *next* kernel applies as its prologue.
        total = jnp.sum(psum, axis=0)[:, 0]
        total_sq = jnp.sum(psq, axis=0)[:, 0]
        mean = total / count
        var = jnp.maximum(total_sq / count - mean * mean, 0.0)   # cancellation guard
        scale = gamma / jnp.sqrt(var + EPS)
        shift = beta - mean * scale
        scale_prev = scale.reshape(cout, 1)
        shift_prev = shift.reshape(cout, 1)
        h = y
        apply_act = True

    sel = _make_pool_selector(height, width)
    residual, pooled = _bn_lrelu_pool(h, scale_prev, shift_prev, sel,
                                      height=height, width=width)
    c = residual.shape[1]
    return (pooled.reshape(n, c, height // 2, width // 2),
            residual.reshape(n, c, height, width))


# ------------------------------------------------------------- reference -----
def _ref_forward(x_nchw, params, dot_dtype=jnp.float32):
    """Plain-JAX reference; dot_dtype mirrors the kernel's matmul operand dtype."""
    x = jnp.transpose(x_nchw, (0, 2, 3, 1)).astype(jnp.float32)   # NHWC
    for (w, gamma, beta) in params:
        xp = jnp.pad(x, ((0, 0), (1, 1), (1, 1), (0, 0)), mode="reflect")
        y = jax.lax.conv_general_dilated(
            xp.astype(dot_dtype), w.astype(dot_dtype),
            window_strides=(1, 1), padding="VALID",
            dimension_numbers=("NHWC", "HWIO", "NHWC"),
            preferred_element_type=jnp.float32,
            precision=jax.lax.Precision.HIGHEST)
        mean = y.mean(axis=(0, 1, 2))
        var = y.var(axis=(0, 1, 2))
        z = (y - mean) / jnp.sqrt(var + EPS) * gamma + beta
        x = jnp.where(z >= 0, z, NEG_SLOPE * z)
    residual = x
    n, hh, ww, c = x.shape
    pooled = x.reshape(n, hh // 2, 2, ww // 2, 2, c).max(axis=(2, 4))
    return (jnp.transpose(pooled, (0, 3, 1, 2)),
            jnp.transpose(residual, (0, 3, 1, 2)))


# ------------------------------------------------------------------ main -----
if __name__ == "__main__":
    key = jax.random.PRNGKey(0)
    N, Cin, Cout, H, W = 2, 4, 8, 16, 16
    k_x, k1, k2, k3, kg, kb = jax.random.split(key, 6)
    x = jax.random.normal(k_x, (N, Cin, H, W), jnp.float32)

    def make_layer(kw, kgam, kbet, cin, cout):
        w = jax.random.normal(kw, (3, 3, cin, cout), jnp.float32) * 0.1   # HWIO
        gamma = 1.0 + 0.1 * jax.random.normal(kgam, (cout,), jnp.float32)
        beta = 0.1 * jax.random.normal(kbet, (cout,), jnp.float32)
        return (w, gamma, beta)

    kg1, kg2, kg3 = jax.random.split(kg, 3)
    kb1, kb2, kb3 = jax.random.split(kb, 3)
    params = [make_layer(k1, kg1, kb1, Cin, Cout),
              make_layer(k2, kg2, kb2, Cout, Cout),
              make_layer(k3, kg3, kb3, Cout, Cout)]

    # 1) f32 matmuls + f32 intermediates: tight structural check (reflect taps /
    #    BN fusion / roll-based pool).
    fwd32 = jax.jit(functools.partial(downsample_forward, dot_dtype=jnp.float32))
    out32, res32 = fwd32(x, params)
    jax.block_until_ready((out32, res32))
    ref_out32, ref_res32 = _ref_forward(x, params, jnp.float32)
    assert out32.shape == (N, Cout, H // 2, W // 2)
    assert res32.shape == (N, Cout, H, W)
    assert jnp.allclose(out32, ref_out32, atol=1e-4, rtol=1e-4)
    assert jnp.allclose(res32, ref_res32, atol=1e-4, rtol=1e-4)

    # 2) bf16 matmul operands + bf16 inter-layer activations (the v6e/v7x
    #    performance configuration), vs a reference that rounds the conv
    #    operands the same way.
    fwd16 = jax.jit(functools.partial(downsample_forward, dot_dtype=jnp.bfloat16))
    out16, res16 = fwd16(x, params)
    jax.block_until_ready((out16, res16))
    ref_out16, ref_res16 = _ref_forward(x, params, jnp.bfloat16)
    assert jnp.allclose(out16, ref_out16, atol=5e-2, rtol=5e-2)
    assert jnp.allclose(res16, ref_res16, atol=5e-2, rtol=5e-2)

    print("KERNEL_OK")
</pallas_src>

<mosaic_0001>
module attributes {stable_mosaic.version = 11 : i64} {
  func.func @_conv_bn_lrelu_kernel(%arg0: i32, %arg1: memref<2x256xi32, #tpu.memory_space<vmem>>, %arg2: memref<1x4x256xf32, #tpu.memory_space<vmem>>, %arg3: memref<8x48xf32, #tpu.memory_space<vmem>>, %arg4: memref<4x1xf32, #tpu.memory_space<vmem>>, %arg5: memref<4x1xf32, #tpu.memory_space<vmem>>, %arg6: memref<1x8x256xf32, #tpu.memory_space<vmem>>, %arg7: memref<1x8x1xf32, #tpu.memory_space<vmem>>, %arg8: memref<1x8x1xf32, #tpu.memory_space<vmem>>, %arg9: memref<48x256xf32, #tpu.memory_space<vmem>>) attributes {dimension_semantics = [#tpu.dimension_semantics<parallel>], iteration_bounds = array<i64: 2>, scalar_prefetch = 0 : i64, scratch_operands = 1 : i64, tpu.core_type = #tpu.core_type<tc>, window_params = [{pipeline_mode = #tpu.pipeline_mode<synchronous>, transform_indices = @transform_0, window_bounds = array<i64: 2, 256>}, {transform_indices = @transform_1, window_bounds = array<i64: 1, 4, 256>}, {pipeline_mode = #tpu.pipeline_mode<synchronous>, transform_indices = @transform_2, window_bounds = array<i64: 8, 48>}, {pipeline_mode = #tpu.pipeline_mode<synchronous>, transform_indices = @transform_3, window_bounds = array<i64: 4, 1>}, {pipeline_mode = #tpu.pipeline_mode<synchronous>, transform_indices = @transform_4, window_bounds = array<i64: 4, 1>}, {transform_indices = @transform_5, window_bounds = array<i64: 1, 8, 256>}, {transform_indices = @transform_6, window_bounds = array<i64: 1, 8, 1>}, {transform_indices = @transform_7, window_bounds = array<i64: 1, 8, 1>}]} {
    %c0 = arith.constant 0 : index
    %c0_0 = arith.constant 0 : index
    %c0_1 = arith.constant 0 : index
    %0 = vector.load %arg2[%c0, %c0_0, %c0_1] : memref<1x4x256xf32, #tpu.memory_space<vmem>>, vector<1x4x256xf32>
    %1 = vector.shape_cast %0 : vector<1x4x256xf32> to vector<4x256xf32>
    %c0_2 = arith.constant 0 : index
    %c0_3 = arith.constant 0 : index
    %2 = vector.load %arg1[%c0_2, %c0_3] : memref<2x256xi32, #tpu.memory_space<vmem>>, vector<2x256xi32>
    %3 = vector.extract_strided_slice %2 {offsets = [0, 0], sizes = [1, 256], strides = [1, 1]} : vector<2x256xi32> to vector<1x256xi32>
    %4 = vector.extract_strided_slice %2 {offsets = [1, 0], sizes = [1, 256], strides = [1, 1]} : vector<2x256xi32> to vector<1x256xi32>
    %c0_i32 = arith.constant 0 : i32
    %5 = vector.broadcast %c0_i32 : i32 to vector<1x256xi32>
    %6 = arith.cmpi eq, %3, %5 : vector<1x256xi32>
    %c15_i32 = arith.constant 15 : i32
    %7 = vector.broadcast %c15_i32 : i32 to vector<1x256xi32>
    %8 = arith.cmpi eq, %3, %7 : vector<1x256xi32>
    %c0_i32_4 = arith.constant 0 : i32
    %9 = vector.broadcast %c0_i32_4 : i32 to vector<1x256xi32>
    %10 = arith.cmpi eq, %4, %9 : vector<1x256xi32>
    %c15_i32_5 = arith.constant 15 : i32
    %11 = vector.broadcast %c15_i32_5 : i32 to vector<1x256xi32>
    %12 = arith.cmpi eq, %4, %11 : vector<1x256xi32>
    %c16_i32 = arith.constant 16 : i32
    %13 = tpu.dynamic_rotate %1 by %c16_i32 dim 1 : vector<4x256xf32>, i32 -> vector<4x256xf32>
    %c240_i32 = arith.constant 240 : i32
    %14 = tpu.dynamic_rotate %1 by %c240_i32 dim 1 : vector<4x256xf32>, i32 -> vector<4x256xf32>
    %15 = vector.shape_cast %6 : vector<1x256xi1> to vector<1x256xi1>
    %16 = vector.broadcast %15 : vector<1x256xi1> to vector<4x256xi1>
    %17 = arith.select %16, %14, %13 : vector<4x256xi1>, vector<4x256xf32>
    %18 = vector.shape_cast %8 : vector<1x256xi1> to vector<1x256xi1>
    %19 = vector.broadcast %18 : vector<1x256xi1> to vector<4x256xi1>
    %20 = arith.select %19, %13, %14 : vector<4x256xi1>, vector<4x256xf32>
    %cst = arith.constant 0.000000e+00 : f32
    %21 = vector.broadcast %cst : f32 to vector<12x256xf32>
    %c36 = arith.constant 36 : index
    %c0_6 = arith.constant 0 : index
    %22 = vector.load %arg9[%c36, %c0_6] : memref<48x256xf32, #tpu.memory_space<vmem>>, vector<12x256xf32>
    tpu.vector_store %arg9[%c36, %c0_6], %21 {strides = array<i32>} : memref<48x256xf32, #tpu.memory_space<vmem>>, vector<12x256xf32>,
    %c1_i32 = arith.constant 1 : i32
    %23 = tpu.dynamic_rotate %17 by %c1_i32 dim 1 : vector<4x256xf32>, i32 -> vector<4x256xf32>
    %c255_i32 = arith.constant 255 : i32
    %24 = tpu.dynamic_rotate %17 by %c255_i32 dim 1 : vector<4x256xf32>, i32 -> vector<4x256xf32>
    %25 = vector.shape_cast %10 : vector<1x256xi1> to vector<1x256xi1>
    %26 = vector.broadcast %25 : vector<1x256xi1> to vector<4x256xi1>
    %27 = arith.select %26, %24, %23 : vector<4x256xi1>, vector<4x256xf32>
    %28 = vector.shape_cast %12 : vector<1x256xi1> to vector<1x256xi1>
    %29 = vector.broadcast %28 : vector<1x256xi1> to vector<4x256xi1>
    %30 = arith.select %29, %23, %24 : vector<4x256xi1>, vector<4x256xf32>
    %c0_7 = arith.constant 0 : index
    %c0_8 = arith.constant 0 : index
    %31 = vector.load %arg9[%c0_7, %c0_8] : memref<48x256xf32, #tpu.memory_space<vmem>>, vector<4x256xf32>
    tpu.vector_store %arg9[%c0_7, %c0_8], %27 {strides = array<i32>} : memref<48x256xf32, #tpu.memory_space<vmem>>, vector<4x256xf32>,
    %c4 = arith.constant 4 : index
    %c0_9 = arith.constant 0 : index
    %32 = vector.load %arg9[%c4, %c0_9] : memref<48x256xf32, #tpu.memory_space<vmem>>, vector<4x256xf32>
    tpu.vector_store %arg9[%c4, %c0_9], %17 {strides = array<i32>} : memref<48x256xf32, #tpu.memory_space<vmem>>, vector<4x256xf32>,
    %c8 = arith.constant 8 : index
    %c0_10 = arith.constant 0 : index
    %33 = vector.load %arg9[%c8, %c0_10] : memref<48x256xf32, #tpu.memory_space<vmem>>, vector<4x256xf32>
    tpu.vector_store %arg9[%c8, %c0_10], %30 {strides = array<i32>} : memref<48x256xf32, #tpu.memory_space<vmem>>, vector<4x256xf32>,
    %c1_i32_11 = arith.constant 1 : i32
    %34 = tpu.dynamic_rotate %1 by %c1_i32_11 dim 1 : vector<4x256xf32>, i32 -> vector<4x256xf32>
    %c255_i32_12 = arith.constant 255 : i32
    %35 = tpu.dynamic_rotate %1 by %c255_i32_12 dim 1 : vector<4x256xf32>, i32 -> vector<4x256xf32>
    %36 = vector.shape_cast %10 : vector<1x256xi1> to vector<1x256xi1>
    %37 = vector.broadcast %36 : vector<1x256xi1> to vector<4x256xi1>
    %38 = arith.select %37, %35, %34 : vector<4x256xi1>, vector<4x256xf32>
    %39 = vector.shape_cast %12 : vector<1x256xi1> to vector<1x256xi1>
    %40 = vector.broadcast %39 : vector<1x256xi1> to vector<4x256xi1>
    %41 = arith.select %40, %34, %35 : vector<4x256xi1>, vector<4x256xf32>
    %c12 = arith.constant 12 : index
    %c0_13 = arith.constant 0 : index
    %42 = vector.load %arg9[%c12, %c0_13] : memref<48x256xf32, #tpu.memory_space<vmem>>, vector<4x256xf32>
    tpu.vector_store %arg9[%c12, %c0_13], %38 {strides = array<i32>} : memref<48x256xf32, #tpu.memory_space<vmem>>, vector<4x256xf32>,
    %c16 = arith.constant 16 : index
    %c0_14 = arith.constant 0 : index
    %43 = vector.load %arg9[%c16, %c0_14] : memref<48x256xf32, #tpu.memory_space<vmem>>, vector<4x256xf32>
    tpu.vector_store %arg9[%c16, %c0_14], %1 {strides = array<i32>} : memref<48x256xf32, #tpu.memory_space<vmem>>, vector<4x256xf32>,
    %c20 = arith.constant 20 : index
    %c0_15 = arith.constant 0 : index
    %44 = vector.load %arg9[%c20, %c0_15] : memref<48x256xf32, #tpu.memory_space<vmem>>, vector<4x256xf32>
    tpu.vector_store %arg9[%c20, %c0_15], %41 {strides = array<i32>} : memref<48x256xf32, #tpu.memory_space<vmem>>, vector<4x256xf32>,
    %c1_i32_16 = arith.constant 1 : i32
    %45 = tpu.dynamic_rotate %20 by %c1_i32_16 dim 1 : vector<4x256xf32>, i32 -> vector<4x256xf32>
    %c255_i32_17 = arith.constant 255 : i32
    %46 = tpu.dynamic_rotate %20 by %c255_i32_17 dim 1 : vector<4x256xf32>, i32 -> vector<4x256xf32>
    %47 = vector.shape_cast %10 : vector<1x256xi1> to vector<1x256xi1>
    %48 = vector.broadcast %47 : vector<1x256xi1> to vector<4x256xi1>
    %49 = arith.select %48, %46, %45 : vector<4x256xi1>, vector<4x256xf32>
    %50 = vector.shape_cast %12 : vector<1x256xi1> to vector<1x256xi1>
    %51 = vector.broadcast %50 : vector<1x256xi1> to vector<4x256xi1>
    %52 = arith.select %51, %45, %46 : vector<4x256xi1>, vector<4x256xf32>
    %c24 = arith.constant 24 : index
    %c0_18 = arith.constant 0 : index
    %53 = vector.load %arg9[%c24, %c0_18] : memref<48x256xf32, #tpu.memory_space<vmem>>, vector<4x256xf32>
    tpu.vector_store %arg9[%c24, %c0_18], %49 {strides = array<i32>} : memref<48x256xf32, #tpu.memory_space<vmem>>, vector<4x256xf32>,
    %c28 = arith.constant 28 : index
    %c0_19 = arith.constant 0 : index
    %54 = vector.load %arg9[%c28, %c0_19] : memref<48x256xf32, #tpu.memory_space<vmem>>, vector<4x256xf32>
    tpu.vector_store %arg9[%c28, %c0_19], %20 {strides = array<i32>} : memref<48x256xf32, #tpu.memory_space<vmem>>, vector<4x256xf32>,
    %c32 = arith.constant 32 : index
    %c0_20 = arith.constant 0 : index
    %55 = vector.load %arg9[%c32, %c0_20] : memref<48x256xf32, #tpu.memory_space<vmem>>, vector<4x256xf32>
    tpu.vector_store %arg9[%c32, %c0_20], %52 {strides = array<i32>} : memref<48x256xf32, #tpu.memory_space<vmem>>, vector<4x256xf32>,
    %c0_21 = arith.constant 0 : index
    %c0_22 = arith.constant 0 : index
    %56 = vector.load %arg3[%c0_21, %c0_22] : memref<8x48xf32, #tpu.memory_space<vmem>>, vector<8x48xf32>
    %c0_23 = arith.constant 0 : index
    %c0_24 = arith.constant 0 : index
    %57 = vector.load %arg9[%c0_23, %c0_24] : memref<48x256xf32, #tpu.memory_space<vmem>>, vector<48x256xf32>
    %cst_25 = arith.constant dense<0.000000e+00> : vector<8x256xf32>
    %58 = tpu.matmul %56, %57, %cst_25 {dimension_numbers = #tpu.dot_dimension_numbers<[1], [0], [0], [1], [0, 0, 1, 1], [], []>} : vector<8x48xf32>, vector<48x256xf32>, vector<8x256xf32> -> vector<8x256xf32>
    %c0_26 = arith.constant 0 : index
    %c0_27 = arith.constant 0 : index
    %c0_28 = arith.constant 0 : index
    %59 = vector.load %arg6[%c0_26, %c0_27, %c0_28] : memref<1x8x256xf32, #tpu.memory_space<vmem>>, vector<1x8x256xf32>
    %60 = vector.shape_cast %59 : vector<1x8x256xf32> to vector<8x256xf32>
    %61 = vector.shape_cast %58 : vector<8x256xf32> to vector<1x8x256xf32>
    tpu.vector_store %arg6[%c0_26, %c0_27, %c0_28], %61 {strides = array<i32>} : memref<1x8x256xf32, #tpu.memory_space<vmem>>, vector<1x8x256xf32>,
    %cst_29 = arith.constant dense<0.000000e+00> : vector<8xf32>
    %62 = vector.multi_reduction <add>, %58, %cst_29 [1] : vector<8x256xf32> to vector<8xf32>
    %63 = vector.shape_cast %62 : vector<8xf32> to vector<8x1xf32>
    %c0_30 = arith.constant 0 : index
    %c0_31 = arith.constant 0 : index
    %c0_32 = arith.constant 0 : index
    %64 = vector.load %arg7[%c0_30, %c0_31, %c0_32] : memref<1x8x1xf32, #tpu.memory_space<vmem>>, vector<1x8x1xf32>
    %65 = vector.shape_cast %64 : vector<1x8x1xf32> to vector<8x1xf32>
    %66 = vector.shape_cast %63 : vector<8x1xf32> to vector<1x8x1xf32>
    tpu.vector_store %arg7[%c0_30, %c0_31, %c0_32], %66 {strides = array<i32>} : memref<1x8x1xf32, #tpu.memory_space<vmem>>, vector<1x8x1xf32>,
    %67 = arith.mulf %58, %58 : vector<8x256xf32>
    %cst_33 = arith.constant dense<0.000000e+00> : vector<8xf32>
    %68 = vector.multi_reduction <add>, %67, %cst_33 [1] : vector<8x256xf32> to vector<8xf32>
    %69 = vector.shape_cast %68 : vector<8xf32> to vector<8x1xf32>
    %c0_34 = arith.constant 0 : index
    %c0_35 = arith.constant 0 : index
    %c0_36 = arith.constant 0 : index
    %70 = vector.load %arg8[%c0_34, %c0_35, %c0_36] : memref<1x8x1xf32, #tpu.memory_space<vmem>>, vector<1x8x1xf32>
    %71 = vector.shape_cast %70 : vector<1x8x1xf32> to vector<8x1xf32>
    %72 = vector.shape_cast %69 : vector<8x1xf32> to vector<1x8x1xf32>
    tpu.vector_store %arg8[%c0_34, %c0_35, %c0_36], %72 {strides = array<i32>} : memref<1x8x1xf32, #tpu.memory_space<vmem>>, vector<1x8x1xf32>,
    return
  }
  func.func @transform_0(%arg0: i32) -> (i32, i32) {
    %c0_i32 = arith.constant 0 : i32
    %c0_i32_0 = arith.constant 0 : i32
    %c0_i32_1 = arith.constant 0 : i32
    return %c0_i32, %c0_i32_0 : i32, i32
  }
  func.func @transform_1(%arg0: i32) -> (i32, i32, i32) {
    %c0_i32 = arith.constant 0 : i32
    %c0_i32_0 = arith.constant 0 : i32
    %c0_i32_1 = arith.constant 0 : i32
    return %arg0, %c0_i32, %c0_i32_0 : i32, i32, i32
  }
  func.func @transform_2(%arg0: i32) -> (i32, i32) {
    %c0_i32 = arith.constant 0 : i32
    %c0_i32_0 = arith.constant 0 : i32
    %c0_i32_1 = arith.constant 0 : i32
    return %c0_i32, %c0_i32_0 : i32, i32
  }
  func.func @transform_3(%arg0: i32) -> (i32, i32) {
    %c0_i32 = arith.constant 0 : i32
    %c0_i32_0 = arith.constant 0 : i32
    %c0_i32_1 = arith.constant 0 : i32
    return %c0_i32, %c0_i32_0 : i32, i32
  }
  func.func @transform_4(%arg0: i32) -> (i32, i32) {
    %c0_i32 = arith.constant 0 : i32
    %c0_i32_0 = arith.constant 0 : i32
    %c0_i32_1 = arith.constant 0 : i32
    return %c0_i32, %c0_i32_0 : i32, i32
  }
  func.func @transform_5(%arg0: i32) -> (i32, i32, i32) {
    %c0_i32 = arith.constant 0 : i32
    %c0_i32_0 = arith.constant 0 : i32
    %c0_i32_1 = arith.constant 0 : i32
    return %arg0, %c0_i32, %c0_i32_0 : i32, i32, i32
  }
  func.func @transform_6(%arg0: i32) -> (i32, i32, i32) {
    %c0_i32 = arith.constant 0 : i32
    %c0_i32_0 = arith.constant 0 : i32
    %c0_i32_1 = arith.constant 0 : i32
    return %arg0, %c0_i32, %c0_i32_0 : i32, i32, i32
  }
  func.func @transform_7(%arg0: i32) -> (i32, i32, i32) {
    %c0_i32 = arith.constant 0 : i32
    %c0_i32_0 = arith.constant 0 : i32
    %c0_i32_1 = arith.constant 0 : i32
    return %arg0, %c0_i32, %c0_i32_0 : i32, i32, i32
  }
}

module attributes {stable_mosaic.version = 11 : i64} {
  func.func @_conv_bn_lrelu_kernel(%arg0: i32, %arg1: memref<2x256xi32, #tpu.memory_space<vmem>>, %arg2: memref<1x8x256xf32, #tpu.memory_space<vmem>>, %arg3: memref<8x80xf32, #tpu.memory_space<vmem>>, %arg4: memref<8x1xf32, #tpu.memory_space<vmem>>, %arg5: memref<8x1xf32, #tpu.memory_space<vmem>>, %arg6: memref<1x8x256xf32, #tpu.memory_space<vmem>>, %arg7: memref<1x8x1xf32, #tpu.memory_space<vmem>>, %arg8: memref<1x8x1xf32, #tpu.memory_space<vmem>>, %arg9: memref<80x256xf32, #tpu.memory_space<vmem>>) attributes {dimension_semantics = [#tpu.dimension_semantics<parallel>], iteration_bounds = array<i64: 2>, scalar_prefetch = 0 : i64, scratch_operands = 1 : i64, tpu.core_type = #tpu.core_type<tc>, window_params = [{pipeline_mode = #tpu.pipeline_mode<synchronous>, transform_indices = @transform_0, window_bounds = array<i64: 2, 256>}, {transform_indices = @transform_1, window_bounds = array<i64: 1, 8, 256>}, {pipeline_mode = #tpu.pipeline_mode<synchronous>, transform_indices = @transform_2, window_bounds = array<i64: 8, 80>}, {pipeline_mode = #tpu.pipeline_mode<synchronous>, transform_indices = @transform_3, window_bounds = array<i64: 8, 1>}, {pipeline_mode = #tpu.pipeline_mode<synchronous>, transform_indices = @transform_4, window_bounds = array<i64: 8, 1>}, {transform_indices = @transform_5, window_bounds = array<i64: 1, 8, 256>}, {transform_indices = @transform_6, window_bounds = array<i64: 1, 8, 1>}, {transform_indices = @transform_7, window_bounds = array<i64: 1, 8, 1>}]} {
    %c0 = arith.constant 0 : index
    %c0_0 = arith.constant 0 : index
    %c0_1 = arith.constant 0 : index
    %0 = vector.load %arg2[%c0, %c0_0, %c0_1] : memref<1x8x256xf32, #tpu.memory_space<vmem>>, vector<1x8x256xf32>
    %1 = vector.shape_cast %0 : vector<1x8x256xf32> to vector<8x256xf32>
    %c0_2 = arith.constant 0 : index
    %c0_3 = arith.constant 0 : index
    %2 = vector.load %arg4[%c0_2, %c0_3] : memref<8x1xf32, #tpu.memory_space<vmem>>, vector<8x1xf32>
    %3 = vector.broadcast %2 : vector<8x1xf32> to vector<8x256xf32>
    %4 = arith.mulf %1, %3 : vector<8x256xf32>
    %c0_4 = arith.constant 0 : index
    %c0_5 = arith.constant 0 : index
    %5 = vector.load %arg5[%c0_4, %c0_5] : memref<8x1xf32, #tpu.memory_space<vmem>>, vector<8x1xf32>
    %6 = vector.broadcast %5 : vector<8x1xf32> to vector<8x256xf32>
    %7 = arith.addf %4, %6 : vector<8x256xf32>
    %cst = arith.constant 0.000000e+00 : f32
    %8 = vector.broadcast %cst : f32 to vector<8x256xf32>
    %9 = arith.cmpf oge, %7, %8 : vector<8x256xf32>
    %cst_6 = arith.constant 2.000000e-01 : f32
    %10 = vector.broadcast %cst_6 : f32 to vector<8x256xf32>
    %11 = arith.mulf %10, %7 : vector<8x256xf32>
    %12 = arith.select %9, %7, %11 : vector<8x256xi1>, vector<8x256xf32>
    %c0_7 = arith.constant 0 : index
    %c0_8 = arith.constant 0 : index
    %13 = vector.load %arg1[%c0_7, %c0_8] : memref<2x256xi32, #tpu.memory_space<vmem>>, vector<2x256xi32>
    %14 = vector.extract_strided_slice %13 {offsets = [0, 0], sizes = [1, 256], strides = [1, 1]} : vector<2x256xi32> to vector<1x256xi32>
    %15 = vector.extract_strided_slice %13 {offsets = [1, 0], sizes = [1, 256], strides = [1, 1]} : vector<2x256xi32> to vector<1x256xi32>
    %c0_i32 = arith.constant 0 : i32
    %16 = vector.broadcast %c0_i32 : i32 to vector<1x256xi32>
    %17 = arith.cmpi eq, %14, %16 : vector<1x256xi32>
    %c15_i32 = arith.constant 15 : i32
    %18 = vector.broadcast %c15_i32 : i32 to vector<1x256xi32>
    %19 = arith.cmpi eq, %14, %18 : vector<1x256xi32>
    %c0_i32_9 = arith.constant 0 : i32
    %20 = vector.broadcast %c0_i32_9 : i32 to vector<1x256xi32>
    %21 = arith.cmpi eq, %15, %20 : vector<1x256xi32>
    %c15_i32_10 = arith.constant 15 : i32
    %22 = vector.broadcast %c15_i32_10 : i32 to vector<1x256xi32>
    %23 = arith.cmpi eq, %15, %22 : vector<1x256xi32>
    %c16_i32 = arith.constant 16 : i32
    %24 = tpu.dynamic_rotate %12 by %c16_i32 dim 1 : vector<8x256xf32>, i32 -> vector<8x256xf32>
    %c240_i32 = arith.constant 240 : i32
    %25 = tpu.dynamic_rotate %12 by %c240_i32 dim 1 : vector<8x256xf32>, i32 -> vector<8x256xf32>
    %26 = vector.shape_cast %17 : vector<1x256xi1> to vector<1x256xi1>
    %27 = vector.broadcast %26 : vector<1x256xi1> to vector<8x256xi1>
    %28 = arith.select %27, %25, %24 : vector<8x256xi1>, vector<8x256xf32>
    %29 = vector.shape_cast %19 : vector<1x256xi1> to vector<1x256xi1>
    %30 = vector.broadcast %29 : vector<1x256xi1> to vector<8x256xi1>
    %31 = arith.select %30, %24, %25 : vector<8x256xi1>, vector<8x256xf32>
    %cst_11 = arith.constant 0.000000e+00 : f32
    %32 = vector.broadcast %cst_11 : f32 to vector<8x256xf32>
    %c72 = arith.constant 72 : index
    %c0_12 = arith.constant 0 : index
    %33 = vector.load %arg9[%c72, %c0_12] : memref<80x256xf32, #tpu.memory_space<vmem>>, vector<8x256xf32>
    tpu.vector_store %arg9[%c72, %c0_12], %32 {strides = array<i32>} : memref<80x256xf32, #tpu.memory_space<vmem>>, vector<8x256xf32>,
    %c1_i32 = arith.constant 1 : i32
    %34 = tpu.dynamic_rotate %28 by %c1_i32 dim 1 : vector<8x256xf32>, i32 -> vector<8x256xf32>
    %c255_i32 = arith.constant 255 : i32
    %35 = tpu.dynamic_rotate %28 by %c255_i32 dim 1 : vector<8x256xf32>, i32 -> vector<8x256xf32>
    %36 = vector.shape_cast %21 : vector<1x256xi1> to vector<1x256xi1>
    %37 = vector.broadcast %36 : vector<1x256xi1> to vector<8x256xi1>
    %38 = arith.select %37, %35, %34 : vector<8x256xi1>, vector<8x256xf32>
    %39 = vector.shape_cast %23 : vector<1x256xi1> to vector<1x256xi1>
    %40 = vector.broadcast %39 : vector<1x256xi1> to vector<8x256xi1>
    %41 = arith.select %40, %34, %35 : vector<8x256xi1>, vector<8x256xf32>
    %c0_13 = arith.constant 0 : index
    %c0_14 = arith.constant 0 : index
    %42 = vector.load %arg9[%c0_13, %c0_14] : memref<80x256xf32, #tpu.memory_space<vmem>>, vector<8x256xf32>
    tpu.vector_store %arg9[%c0_13, %c0_14], %38 {strides = array<i32>} : memref<80x256xf32, #tpu.memory_space<vmem>>, vector<8x256xf32>,
    %c8 = arith.constant 8 : index
    %c0_15 = arith.constant 0 : index
    %43 = vector.load %arg9[%c8, %c0_15] : memref<80x256xf32, #tpu.memory_space<vmem>>, vector<8x256xf32>
    tpu.vector_store %arg9[%c8, %c0_15], %28 {strides = array<i32>} : memref<80x256xf32, #tpu.memory_space<vmem>>, vector<8x256xf32>,
    %c16 = arith.constant 16 : index
    %c0_16 = arith.constant 0 : index
    %44 = vector.load %arg9[%c16, %c0_16] : memref<80x256xf32, #tpu.memory_space<vmem>>, vector<8x256xf32>
    tpu.vector_store %arg9[%c16, %c0_16], %41 {strides = array<i32>} : memref<80x256xf32, #tpu.memory_space<vmem>>, vector<8x256xf32>,
    %c1_i32_17 = arith.constant 1 : i32
    %45 = tpu.dynamic_rotate %12 by %c1_i32_17 dim 1 : vector<8x256xf32>, i32 -> vector<8x256xf32>
    %c255_i32_18 = arith.constant 255 : i32
    %46 = tpu.dynamic_rotate %12 by %c255_i32_18 dim 1 : vector<8x256xf32>, i32 -> vector<8x256xf32>
    %47 = vector.shape_cast %21 : vector<1x256xi1> to vector<1x256xi1>
    %48 = vector.broadcast %47 : vector<1x256xi1> to vector<8x256xi1>
    %49 = arith.select %48, %46, %45 : vector<8x256xi1>, vector<8x256xf32>
    %50 = vector.shape_cast %23 : vector<1x256xi1> to vector<1x256xi1>
    %51 = vector.broadcast %50 : vector<1x256xi1> to vector<8x256xi1>
    %52 = arith.select %51, %45, %46 : vector<8x256xi1>, vector<8x256xf32>
    %c24 = arith.constant 24 : index
    %c0_19 = arith.constant 0 : index
    %53 = vector.load %arg9[%c24, %c0_19] : memref<80x256xf32, #tpu.memory_space<vmem>>, vector<8x256xf32>
    tpu.vector_store %arg9[%c24, %c0_19], %49 {strides = array<i32>} : memref<80x256xf32, #tpu.memory_space<vmem>>, vector<8x256xf32>,
    %c32 = arith.constant 32 : index
    %c0_20 = arith.constant 0 : index
    %54 = vector.load %arg9[%c32, %c0_20] : memref<80x256xf32, #tpu.memory_space<vmem>>, vector<8x256xf32>
    tpu.vector_store %arg9[%c32, %c0_20], %12 {strides = array<i32>} : memref<80x256xf32, #tpu.memory_space<vmem>>, vector<8x256xf32>,
    %c40 = arith.constant 40 : index
    %c0_21 = arith.constant 0 : index
    %55 = vector.load %arg9[%c40, %c0_21] : memref<80x256xf32, #tpu.memory_space<vmem>>, vector<8x256xf32>
    tpu.vector_store %arg9[%c40, %c0_21], %52 {strides = array<i32>} : memref<80x256xf32, #tpu.memory_space<vmem>>, vector<8x256xf32>,
    %c1_i32_22 = arith.constant 1 : i32
    %56 = tpu.dynamic_rotate %31 by %c1_i32_22 dim 1 : vector<8x256xf32>, i32 -> vector<8x256xf32>
    %c255_i32_23 = arith.constant 255 : i32
    %57 = tpu.dynamic_rotate %31 by %c255_i32_23 dim 1 : vector<8x256xf32>, i32 -> vector<8x256xf32>
    %58 = vector.shape_cast %21 : vector<1x256xi1> to vector<1x256xi1>
    %59 = vector.broadcast %58 : vector<1x256xi1> to vector<8x256xi1>
    %60 = arith.select %59, %57, %56 : vector<8x256xi1>, vector<8x256xf32>
    %61 = vector.shape_cast %23 : vector<1x256xi1> to vector<1x256xi1>
    %62 = vector.broadcast %61 : vector<1x256xi1> to vector<8x256xi1>
    %63 = arith.select %62, %56, %57 : vector<8x256xi1>, vector<8x256xf32>
    %c48 = arith.constant 48 : index
    %c0_24 = arith.constant 0 : index
    %64 = vector.load %arg9[%c48, %c0_24] : memref<80x256xf32, #tpu.memory_space<vmem>>, vector<8x256xf32>
    tpu.vector_store %arg9[%c48, %c0_24], %60 {strides = array<i32>} : memref<80x256xf32, #tpu.memory_space<vmem>>, vector<8x256xf32>,
    %c56 = arith.constant 56 : index
    %c0_25 = arith.constant 0 : index
    %65 = vector.load %arg9[%c56, %c0_25] : memref<80x256xf32, #tpu.memory_space<vmem>>, vector<8x256xf32>
    tpu.vector_store %arg9[%c56, %c0_25], %31 {strides = array<i32>} : memref<80x256xf32, #tpu.memory_space<vmem>>, vector<8x256xf32>,
    %c64 = arith.constant 64 : index
    %c0_26 = arith.constant 0 : index
    %66 = vector.load %arg9[%c64, %c0_26] : memref<80x256xf32, #tpu.memory_space<vmem>>, vector<8x256xf32>
    tpu.vector_store %arg9[%c64, %c0_26], %63 {strides = array<i32>} : memref<80x256xf32, #tpu.memory_space<vmem>>, vector<8x256xf32>,
    %c0_27 = arith.constant 0 : index
    %c0_28 = arith.constant 0 : index
    %67 = vector.load %arg3[%c0_27, %c0_28] : memref<8x80xf32, #tpu.memory_space<vmem>>, vector<8x80xf32>
    %c0_29 = arith.constant 0 : index
    %c0_30 = arith.constant 0 : index
    %68 = vector.load %arg9[%c0_29, %c0_30] : memref<80x256xf32, #tpu.memory_space<vmem>>, vector<80x256xf32>
    %cst_31 = arith.constant dense<0.000000e+00> : vector<8x256xf32>
    %69 = tpu.matmul %67, %68, %cst_31 {dimension_numbers = #tpu.dot_dimension_numbers<[1], [0], [0], [1], [0, 0, 1, 1], [], []>} : vector<8x80xf32>, vector<80x256xf32>, vector<8x256xf32> -> vector<8x256xf32>
    %c0_32 = arith.constant 0 : index
    %c0_33 = arith.constant 0 : index
    %c0_34 = arith.constant 0 : index
    %70 = vector.load %arg6[%c0_32, %c0_33, %c0_34] : memref<1x8x256xf32, #tpu.memory_space<vmem>>, vector<1x8x256xf32>
    %71 = vector.shape_cast %70 : vector<1x8x256xf32> to vector<8x256xf32>
    %72 = vector.shape_cast %69 : vector<8x256xf32> to vector<1x8x256xf32>
    tpu.vector_store %arg6[%c0_32, %c0_33, %c0_34], %72 {strides = array<i32>} : memref<1x8x256xf32, #tpu.memory_space<vmem>>, vector<1x8x256xf32>,
    %cst_35 = arith.constant dense<0.000000e+00> : vector<8xf32>
    %73 = vector.multi_reduction <add>, %69, %cst_35 [1] : vector<8x256xf32> to vector<8xf32>
    %74 = vector.shape_cast %73 : vector<8xf32> to vector<8x1xf32>
    %c0_36 = arith.constant 0 : index
    %c0_37 = arith.constant 0 : index
    %c0_38 = arith.constant 0 : index
    %75 = vector.load %arg7[%c0_36, %c0_37, %c0_38] : memref<1x8x1xf32, #tpu.memory_space<vmem>>, vector<1x8x1xf32>
    %76 = vector.shape_cast %75 : vector<1x8x1xf32> to vector<8x1xf32>
    %77 = vector.shape_cast %74 : vector<8x1xf32> to vector<1x8x1xf32>
    tpu.vector_store %arg7[%c0_36, %c0_37, %c0_38], %77 {strides = array<i32>} : memref<1x8x1xf32, #tpu.memory_space<vmem>>, vector<1x8x1xf32>,
    %78 = arith.mulf %69, %69 : vector<8x256xf32>
    %cst_39 = arith.constant dense<0.000000e+00> : vector<8xf32>
    %79 = vector.multi_reduction <add>, %78, %cst_39 [1] : vector<8x256xf32> to vector<8xf32>
    %80 = vector.shape_cast %79 : vector<8xf32> to vector<8x1xf32>
    %c0_40 = arith.constant 0 : index
    %c0_41 = arith.constant 0 : index
    %c0_42 = arith.constant 0 : index
    %81 = vector.load %arg8[%c0_40, %c0_41, %c0_42] : memref<1x8x1xf32, #tpu.memory_space<vmem>>, vector<1x8x1xf32>
    %82 = vector.shape_cast %81 : vector<1x8x1xf32> to vector<8x1xf32>
    %83 = vector.shape_cast %80 : vector<8x1xf32> to vector<1x8x1xf32>
    tpu.vector_store %arg8[%c0_40, %c0_41, %c0_42], %83 {strides = array<i32>} : memref<1x8x1xf32, #tpu.memory_space<vmem>>, vector<1x8x1xf32>,
    return
  }
  func.func @transform_0(%arg0: i32) -> (i32, i32) {
    %c0_i32 = arith.constant 0 : i32
    %c0_i32_0 = arith.constant 0 : i32
    %c0_i32_1 = arith.constant 0 : i32
    return %c0_i32, %c0_i32_0 : i32, i32
  }
  func.func @transform_1(%arg0: i32) -> (i32, i32, i32) {
    %c0_i32 = arith.constant 0 : i32
    %c0_i32_0 = arith.constant 0 : i32
    %c0_i32_1 = arith.constant 0 : i32
    return %arg0, %c0_i32, %c0_i32_0 : i32, i32, i32
  }
  func.func @transform_2(%arg0: i32) -> (i32, i32) {
    %c0_i32 = arith.constant 0 : i32
    %c0_i32_0 = arith.constant 0 : i32
    %c0_i32_1 = arith.constant 0 : i32
    return %c0_i32, %c0_i32_0 : i32, i32
  }
  func.func @transform_3(%arg0: i32) -> (i32, i32) {
    %c0_i32 = arith.constant 0 : i32
    %c0_i32_0 = arith.constant 0 : i32
    %c0_i32_1 = arith.constant 0 : i32
    return %c0_i32, %c0_i32_0 : i32, i32
  }
  func.func @transform_4(%arg0: i32) -> (i32, i32) {
    %c0_i32 = arith.constant 0 : i32
    %c0_i32_0 = arith.constant 0 : i32
    %c0_i32_1 = arith.constant 0 : i32
    return %c0_i32, %c0_i32_0 : i32, i32
  }
  func.func @transform_5(%arg0: i32) -> (i32, i32, i32) {
    %c0_i32 = arith.constant 0 : i32
    %c0_i32_0 = arith.constant 0 : i32
    %c0_i32_1 = arith.constant 0 : i32
    return %arg0, %c0_i32, %c0_i32_0 : i32, i32, i32
  }
  func.func @transform_6(%arg0: i32) -> (i32, i32, i32) {
    %c0_i32 = arith.constant 0 : i32
    %c0_i32_0 = arith.constant 0 : i32
    %c0_i32_1 = arith.constant 0 : i32
    return %arg0, %c0_i32, %c0_i32_0 : i32, i32, i32
  }
  func.func @transform_7(%arg0: i32) -> (i32, i32, i32) {
    %c0_i32 = arith.constant 0 : i32
    %c0_i32_0 = arith.constant 0 : i32
    %c0_i32_1 = arith.constant 0 : i32
    return %arg0, %c0_i32, %c0_i32_0 : i32, i32, i32
  }
}

module attributes {stable_mosaic.version = 11 : i64} {
  func.func @_bn_lrelu_pool_kernel(%arg0: i32, %arg1: memref<1x8x256xf32, #tpu.memory_space<vmem>>, %arg2: memref<8x1xf32, #tpu.memory_space<vmem>>, %arg3: memref<8x1xf32, #tpu.memory_space<vmem>>, %arg4: memref<256x64xf32, #tpu.memory_space<vmem>>, %arg5: memref<1x8x256xf32, #tpu.memory_space<vmem>>, %arg6: memref<1x8x64xf32, #tpu.memory_space<vmem>>) attributes {dimension_semantics = [#tpu.dimension_semantics<parallel>], iteration_bounds = array<i64: 2>, scalar_prefetch = 0 : i64, scratch_operands = 0 : i64, tpu.core_type = #tpu.core_type<tc>, window_params = [{transform_indices = @transform_0, window_bounds = array<i64: 1, 8, 256>}, {pipeline_mode = #tpu.pipeline_mode<synchronous>, transform_indices = @transform_1, window_bounds = array<i64: 8, 1>}, {pipeline_mode = #tpu.pipeline_mode<synchronous>, transform_indices = @transform_2, window_bounds = array<i64: 8, 1>}, {pipeline_mode = #tpu.pipeline_mode<synchronous>, transform_indices = @transform_3, window_bounds = array<i64: 256, 64>}, {transform_indices = @transform_4, window_bounds = array<i64: 1, 8, 256>}, {transform_indices = @transform_5, window_bounds = array<i64: 1, 8, 64>}]} {
    %c0 = arith.constant 0 : index
    %c0_0 = arith.constant 0 : index
    %c0_1 = arith.constant 0 : index
    %0 = vector.load %arg1[%c0, %c0_0, %c0_1] : memref<1x8x256xf32, #tpu.memory_space<vmem>>, vector<1x8x256xf32>
    %1 = vector.shape_cast %0 : vector<1x8x256xf32> to vector<8x256xf32>
    %c0_2 = arith.constant 0 : index
    %c0_3 = arith.constant 0 : index
    %2 = vector.load %arg2[%c0_2, %c0_3] : memref<8x1xf32, #tpu.memory_space<vmem>>, vector<8x1xf32>
    %3 = vector.broadcast %2 : vector<8x1xf32> to vector<8x256xf32>
    %4 = arith.mulf %1, %3 : vector<8x256xf32>
    %c0_4 = arith.constant 0 : index
    %c0_5 = arith.constant 0 : index
    %5 = vector.load %arg3[%c0_4, %c0_5] : memref<8x1xf32, #tpu.memory_space<vmem>>, vector<8x1xf32>
    %6 = vector.broadcast %5 : vector<8x1xf32> to vector<8x256xf32>
    %7 = arith.addf %4, %6 : vector<8x256xf32>
    %cst = arith.constant 0.000000e+00 : f32
    %8 = vector.broadcast %cst : f32 to vector<8x256xf32>
    %9 = arith.cmpf oge, %7, %8 : vector<8x256xf32>
    %cst_6 = arith.constant 2.000000e-01 : f32
    %10 = vector.broadcast %cst_6 : f32 to vector<8x256xf32>
    %11 = arith.mulf %10, %7 : vector<8x256xf32>
    %12 = arith.select %9, %7, %11 : vector<8x256xi1>, vector<8x256xf32>
    %c0_7 = arith.constant 0 : index
    %c0_8 = arith.constant 0 : index
    %c0_9 = arith.constant 0 : index
    %13 = vector.load %arg5[%c0_7, %c0_8, %c0_9] : memref<1x8x256xf32, #tpu.memory_space<vmem>>, vector<1x8x256xf32>
    %14 = vector.shape_cast %13 : vector<1x8x256xf32> to vector<8x256xf32>
    %15 = vector.shape_cast %12 : vector<8x256xf32> to vector<1x8x256xf32>
    tpu.vector_store %arg5[%c0_7, %c0_8, %c0_9], %15 {strides = array<i32>} : memref<1x8x256xf32, #tpu.memory_space<vmem>>, vector<1x8x256xf32>,
    %c255_i32 = arith.constant 255 : i32
    %16 = tpu.dynamic_rotate %12 by %c255_i32 dim 1 : vector<8x256xf32>, i32 -> vector<8x256xf32>
    %17 = arith.maximumf %12, %16 : vector<8x256xf32>
    %c240_i32 = arith.constant 240 : i32
    %18 = tpu.dynamic_rotate %17 by %c240_i32 dim 1 : vector<8x256xf32>, i32 -> vector<8x256xf32>
    %19 = arith.maximumf %17, %18 : vector<8x256xf32>
    %c0_10 = arith.constant 0 : index
    %c0_11 = arith.constant 0 : index
    %20 = vector.load %arg4[%c0_10, %c0_11] : memref<256x64xf32, #tpu.memory_space<vmem>>, vector<256x64xf32>
    %cst_12 = arith.constant dense<0.000000e+00> : vector<8x64xf32>
    %21 = tpu.matmul %19, %20, %cst_12 {dimension_numbers = #tpu.dot_dimension_numbers<[1], [0], [0], [1], [0, 0, 1, 1], [], []>} : vector<8x256xf32>, vector<256x64xf32>, vector<8x64xf32> -> vector<8x64xf32>
    %c0_13 = arith.constant 0 : index
    %c0_14 = arith.constant 0 : index
    %c0_15 = arith.constant 0 : index
    %22 = vector.load %arg6[%c0_13, %c0_14, %c0_15] : memref<1x8x64xf32, #tpu.memory_space<vmem>>, vector<1x8x64xf32>
    %23 = vector.shape_cast %22 : vector<1x8x64xf32> to vector<8x64xf32>
    %24 = vector.shape_cast %21 : vector<8x64xf32> to vector<1x8x64xf32>
    tpu.vector_store %arg6[%c0_13, %c0_14, %c0_15], %24 {strides = array<i32>} : memref<1x8x64xf32, #tpu.memory_space<vmem>>, vector<1x8x64xf32>,
    return
  }
  func.func @transform_0(%arg0: i32) -> (i32, i32, i32) {
    %c0_i32 = arith.constant 0 : i32
    %c0_i32_0 = arith.constant 0 : i32
    %c0_i32_1 = arith.constant 0 : i32
    return %arg0, %c0_i32, %c0_i32_0 : i32, i32, i32
  }
  func.func @transform_1(%arg0: i32) -> (i32, i32) {
    %c0_i32 = arith.constant 0 : i32
    %c0_i32_0 = arith.constant 0 : i32
    %c0_i32_1 = arith.constant 0 : i32
    return %c0_i32, %c0_i32_0 : i32, i32
  }
  func.func @transform_2(%arg0: i32) -> (i32, i32) {
    %c0_i32 = arith.constant 0 : i32
    %c0_i32_0 = arith.constant 0 : i32
    %c0_i32_1 = arith.constant 0 : i32
    return %c0_i32, %c0_i32_0 : i32, i32
  }
  func.func @transform_3(%arg0: i32) -> (i32, i32) {
    %c0_i32 = arith.constant 0 : i32
    %c0_i32_0 = arith.constant 0 : i32
    %c0_i32_1 = arith.constant 0 : i32
    return %c0_i32, %c0_i32_0 : i32, i32
  }
  func.func @transform_4(%arg0: i32) -> (i32, i32, i32) {
    %c0_i32 = arith.constant 0 : i32
    %c0_i32_0 = arith.constant 0 : i32
    %c0_i32_1 = arith.constant 0 : i32
    return %arg0, %c0_i32, %c0_i32_0 : i32, i32, i32
  }
  func.func @transform_5(%arg0: i32) -> (i32, i32, i32) {
    %c0_i32 = arith.constant 0 : i32
    %c0_i32_0 = arith.constant 0 : i32
    %c0_i32_1 = arith.constant 0 : i32
    return %arg0, %c0_i32, %c0_i32_0 : i32, i32, i32
  }
}

</mosaic_0001>

<bundles_post_ra>
// kernel: downsample_forward.7
= control target key start
LH: loop header
LB: loop body
LE: loop exit
PB: predicated region body
PF: predicated region fallthrough
CT: control target
= control target key end

     0   :  { %s616_s18 = smov 0   ;;  %s752_s0 = inlined_call_operand.vmem [shape: f32[2,8,256], index: 0, kind: input, shape index: {}]   ;;  %s753_s1 = inlined_call_operand.vmem [shape: f32[8,1], index: 1, kind: input, shape index: {}]   ;;  %s754_s2 = inlined_call_operand.vmem [shape: f32[8,1], index: 2, kind: input, shape index: {}]   ;;  %s755_s3 = inlined_call_operand.vmem [shape: f32[256,64], index: 3, kind: input, shape index: {}]   ;;  %s756_s4 = inlined_call_operand.vmem [shape: f32[2,8,256], index: 4, kind: output, shape index: {0}]   ;;  %s757_s5 = inlined_call_operand.vmem [shape: f32[2,8,64], index: 5, kind: output, shape index: {1}]  }
   0x1 LB: > { %s472_s19 = sadd.s32 4294967295, %s581_s18   ;;  %p476_p0 = scmp.ge.s32.totalorder %s581_s18, 1  ;;  %s581_s18 = sphi %s616_s18, %s16_s18  }
   0x2   : > { %p190_p1 = scmp.lt.s32.totalorder %s581_s18, 3 }
   0x4   : > { %p191_p2 = pnand %p476_p0, %p190_p1 }
   0x5   : > { %v238_v0 = vld [vmem:[%s753_s1] sm:$0xff] (!%p191_p2)  ;;  %v583_v1 = vmov (!%p191_p2), 0   ;;  %p222_p3 = scmp.lt.s32.totalorder (!%p191_p2), %s472_s19, 1  ;;  %v299_v12 = vld [vmem:[%s755_s3 + $0x88] sm:$0xff] (!%p191_p2)  ;;  %v300_v18 = vld [vmem:[%s755_s3 + $0x90] sm:$0xff] (!%p191_p2)  ;;  %s584_s28 = smov (!%p191_p2), 127   ;;  %v266_v58 = vlaneseq (!%p191_p2) }
   0x6   : > { %194 = sbr.rel (%p191_p2) target bundleno = 605 (0x25d), region = 36  ;;  %564 = vset.pattern.permute.xlu0 (!%p191_p2), %v583_v1  ;;  %v246_v2 = vld [vmem:[%s754_s2] sm:$0xff] (!%p191_p2)  ;;  %v283_v17 = vld [vmem:[%s755_s3 + $0x8] sm:$0xff] (!%p191_p2)  ;;  %v301_v19 = vld [vmem:[%s755_s3 + $0x98] sm:$0xff] (!%p191_p2)  ;;  %vm384_vm4 = vcmask (!%p191_p2), 523264  }
   0x7   : > { %241 = vperm.xlu0 (!%p191_p2), %564, %v238_v0   ;;  %v298_v11 = vld [vmem:[%s755_s3 + $0x80] sm:$0xff] (!%p191_p2)  ;;  %v525_v23 = vpack.c.bf16 (!%p191_p2), %v301_v19, %v300_v18  ;;  %v284_v24 = vld [vmem:[%s755_s3 + $0x10] sm:$0xff] (!%p191_p2)  ;;  %v285_v25 = vld [vmem:[%s755_s3 + $0x18] sm:$0xff] (!%p191_p2)  ;;  %v267_v0 = vand.u32 (!%p191_p2), 127, %v266_v58 }
   0x8   : > { %v282_v13 = vld [vmem:[%s755_s3] sm:$0xff] (!%p191_p2)  ;;  %v521_v16 = vpack.c.bf16 (!%p191_p2), %v299_v12, %v298_v11  ;;  %v303_v28 = vld [vmem:[%s755_s3 + $0xa8] sm:$0xff] (!%p191_p2)  ;;  %v527_v29 = vpack.c.bf16 (!%p191_p2), %v285_v25, %v284_v24  ;;  %v304_v33 = vld [vmem:[%s755_s3 + $0xb0] sm:$0xff] (!%p191_p2) }
   0x9   : > { %v523_v22 = vpack.c.bf16 (!%p191_p2), %v283_v17, %v282_v13  ;;  %v302_v26 = vld [vmem:[%s755_s3 + $0xa0] sm:$0xff] (!%p191_p2)  ;;  %v287_v32 = vld [vmem:[%s755_s3 + $0x28] sm:$0xff] (!%p191_p2)  ;;  %v305_v34 = vld [vmem:[%s755_s3 + $0xb8] sm:$0xff] (!%p191_p2)  ;;  %vm268_vm2 = vcmp.lt.s32.totalorder (!%p191_p2), %v267_v0, 127  ;;  %vm277_vm3 = vcmp.lt.s32.totalorder (!%p191_p2), %v267_v0, 112 }
   0xa   : > { %522 = vmatprep.subr.bf16.mxu0 (!%p191_p2), %v521_v16  ;;  %v529_v30 = vpack.c.bf16 (!%p191_p2), %v303_v28, %v302_v26  ;;  %v286_v31 = vld [vmem:[%s755_s3 + $0x20] sm:$0xff] (!%p191_p2)  ;;  %v533_v36 = vpack.c.bf16 (!%p191_p2), %v305_v34, %v304_v33  ;;  %v288_v37 = vld [vmem:[%s755_s3 + $0x30] sm:$0xff] (!%p191_p2)  ;;  %v289_v38 = vld [vmem:[%s755_s3 + $0x38] sm:$0xff] (!%p191_p2) }
   0xb   : > { %249 = vperm.xlu0 (!%p191_p2), %564, %v246_v2   ;;  %524 = vmatpush3.bf16.msra.mxu0 (!%p191_p2), %v523_v22  ;;  %v531_v35 = vpack.c.bf16 (!%p191_p2), %v287_v32, %v286_v31  ;;  %v306_v39 = vld [vmem:[%s755_s3 + $0xc0] sm:$0xff] (!%p191_p2)  ;;  %v307_v40 = vld [vmem:[%s755_s3 + $0xc8] sm:$0xff] (!%p191_p2)  ;;  %v535_v41 = vpack.c.bf16 (!%p191_p2), %v289_v38, %v288_v37  ;;  %v308_v45 = vld [vmem:[%s755_s3 + $0xd0] sm:$0xff] (!%p191_p2) }
   0xc   : > { %526 = vmatprep.subr.bf16.mxu0 (!%p191_p2), %v525_v23  ;;  %v537_v42 = vpack.c.bf16 (!%p191_p2), %v307_v40, %v306_v39  ;;  %v290_v43 = vld [vmem:[%s755_s3 + $0x40] sm:$0xff] (!%p191_p2)  ;;  %v291_v44 = vld [vmem:[%s755_s3 + $0x48] sm:$0xff] (!%p191_p2)  ;;  %v309_v46 = vld [vmem:[%s755_s3 + $0xd8] sm:$0xff] (!%p191_p2) }
   0xd   : > { %s759_s19 = smov (!%p222_p3, %s472_s19), 1  ;;  %v539_v47 = vpack.c.bf16 %v291_v44, %v290_v43  ;;  %v541_v48 = vpack.c.bf16 %v309_v46, %v308_v45  ;;  %v292_v49 = vld [vmem:[%s755_s3 + $0x50] sm:$0xff]  ;;  %v293_v50 = vld [vmem:[%s755_s3 + $0x58] sm:$0xff]  ;;  %v310_v51 = vld [vmem:[%s755_s3 + $0xe0] sm:$0xff] }
   0xe   : > { %s484_s24 = sshll.u32 %s759_s19, 4  ;;  %v311_v52 = vld [vmem:[%s755_s3 + $0xe8] sm:$0xff]  ;;  %v543_v53 = vpack.c.bf16 %v293_v50, %v292_v49  ;;  %v294_v55 = vld [vmem:[%s755_s3 + $0x60] sm:$0xff]  ;;  %v312_v59 = vld [vmem:[%s755_s3 + $0xf0] sm:$0xff] }
   0xf   : > { %s226_s27 = scalar_lea.vmem %s752_s0, %s484_s24  ;;  %s231_s11 = scalar_lea.vmem %s756_s4, %s484_s24  ;;  %528 = vmatpush3.bf16.msra.mxu0 %v527_v29  ;;  %v545_v54 = vpack.c.bf16 %v311_v52, %v310_v51  ;;  %v295_v56 = vld [vmem:[%s755_s3 + $0x68] sm:$0xff]  ;;  %v313_v60 = vld [vmem:[%s755_s3 + $0xf8] sm:$0xff]  ;;  %v296_v62 = vld [vmem:[%s755_s3 + $0x70] sm:$0xff] }
  0x10   : > { %v236_v4 = vld [vmem:[%s226_s27] sm:$0xff]  ;;  %v237_v5 = vld [vmem:[%s226_s27 + $0x8] sm:$0xff]  ;;  %530 = vmatprep.subr.bf16.mxu0 %v529_v30  ;;  %v547_v57 = vpack.c.bf16 %v295_v56, %v294_v55  ;;  %v549_v61 = vpack.c.bf16 %v313_v60, %v312_v59  ;;  %v297_v63 = vld [vmem:[%s755_s3 + $0x78] sm:$0xff]  ;;  %s585_s27 = smov 112  }
  0x11   : > { %v551_v1 = vpack.c.bf16 %v297_v63, %v296_v62 }
  0x13   : > { %532 = vmatpush3.bf16.msra.mxu0 %v531_v35 }
  0x14   : > { %534 = vmatprep.subr.bf16.mxu0 %v533_v36 }
  0x17   : > { %536 = vmatpush3.bf16.msra.mxu0 %v535_v41 }
  0x18   : > { %538 = vmatprep.subr.bf16.mxu0 %v537_v42 }
  0x1b   : > { %540 = vmatpush3.bf16.msra.mxu0 %v539_v47 }
  0x1c   : > { %542 = vmatprep.subr.bf16.mxu0 %v541_v48 }
  0x1f   : > { %544 = vmatpush3.bf16.msra.mxu0 %v543_v53 }
  0x20   : > { %546 = vmatprep.subr.bf16.mxu0 %v545_v54 }
  0x23   : > { %548 = vmatpush3.bf16.msra.mxu0 %v547_v57 }
  0x24   : > { %550 = vmatprep.subr.bf16.mxu0 %v549_v61 }
  0x27   : > { %552 = vmatpush3.bf16.msra.mxu0 %v551_v1 }
  0x86   : > { %v242_v3 = vpop.permute.xlu0 %241 }
  0x87   : > { %v244_v6 = vmul.f32 %v242_v3, %v236_v4  ;;  %v245_v7 = vmul.f32 %v242_v3, %v237_v5 }
  0x8a   : > { %v250_v8 = vpop.permute.xlu0 %249 }
  0x8b   : > { %v252_v9 = vadd.f32 %v250_v8, %v244_v6  ;;  %v253_v10 = vadd.f32 %v250_v8, %v245_v7 }
  0x8d   : > { %vm254_vm0 = vcmp.ge.f32.partialorder %v252_v9, 0.0  ;;  %vm255_vm1 = vcmp.ge.f32.partialorder %v253_v10, 0.0  ;;  %v256_v14 = vmul.f32 0.2, %v252_v9  ;;  %v257_v15 = vmul.f32 0.2, %v253_v10 }
  0x8f   : > { %v657_v20 = vsel %vm254_vm0, %v252_v9, %v256_v14  ;;  %v659_v21 = vsel %vm255_vm1, %v253_v10, %v257_v15 }
  0x90   : > { %261 = vst [vmem:[%s231_s11 + $0x8] sm:$0xff] %v659_v21  ;;  %v565_v27 = vpack.i.bf16 %v659_v21, %v657_v20  ;;  %260 = vst [vmem:[%s231_s11] sm:$0xff] %v657_v20 }
  0x92   : > { %566 = vrot.lane.b32.xlu1 %v565_v27, %s584_s28  ;;  %s481_s28 = sshll.u32 %s759_s19, 3 }
  0x93   : > { %s235_s6 = scalar_lea.vmem %s757_s5, %s481_s28 }
 0x104   : > { %v567_v2 = vpop.permute.xlu1 %566 }
 0x105   : > { %v569_v3 = vunpack.i.h.bf16 %v567_v2  ;;  %v568_v4 = vunpack.i.l.bf16 %v567_v2 }
 0x107   : > { %v269_v5 = vsel %vm268_vm2, %v568_v4, %v569_v3  ;;  %v270_v6 = vsel %vm268_vm2, %v569_v3, %v568_v4 }
 0x108   : > { %v271_v7 = vmax.f32 %v657_v20, %v269_v5  ;;  %v272_v8 = vmax.f32 %v659_v21, %v270_v6 }
 0x10a   : > { %v570_v9 = vpack.i.bf16 %v272_v8, %v271_v7 }
 0x10c   : > { %571 = vrot.lane.b32.xlu1 %v570_v9, %s585_s27 }
 0x17e   : > { %v572_v10 = vpop.permute.xlu1 %571 }
 0x17f   : > { %v574_v11 = vunpack.i.h.bf16 %v572_v10  ;;  %v573_v12 = vunpack.i.l.bf16 %v572_v10 }
 0x181   : > { %v279_v13 = vsel %vm277_vm3, %v574_v11, %v573_v12  ;;  %v278_v14 = vsel %vm277_vm3, %v573_v12, %v574_v11 }
 0x182   : > { %v281_v15 = vmax.f32 %v272_v8, %v279_v13  ;;  %v280_v16 = vmax.f32 %v271_v7, %v278_v14 }
 0x184   : > { %378 = vmatprep.mubr.f32.mxu0 %v281_v15 }
 0x185   : > { %379 = vmatmul.mubr.f32.vlgmr.msra.gmra.mrb[0].mxu0 %v280_v16 }
 0x258   : > { %v518_v17 = vpop.f32.mrb[0].mxu0 }
 0x259   : > { %v519_v18 = vpop.f32.mrb[1].mxu0 }
 0x25a   : > { %v520_v19 = vadd.f32 %v519_v18, %v518_v17 }
 0x25c   : > { %385 = vst.msk [vmem:[%s235_s6] sm:$0xff] %vm384_vm4, %v520_v19 }
 0x25d PF: > { %s16_s18 = sadd.s32 1, %s581_s18  }
 0x25e   : > { %p13_p4 = scmp.ge.s32.totalorder %s16_s18, 4  }
 0x260   :  { %15 = sbr.rel (!%p13_p4) target bundleno = 1 (0x1), region = 78 }

// kernel: downsample_forward.4
= control target key start
LH: loop header
LB: loop body
LE: loop exit
PB: predicated region body
PF: predicated region fallthrough
CT: control target
= control target key end

     0   :  { %s812_s24 = smov 0   ;;  %s935_s0 = inlined_call_operand.vmem [shape: s32[2,256], index: 0, kind: input, shape index: {}]   ;;  %s936_s1 = inlined_call_operand.vmem [shape: f32[2,4,256], index: 1, kind: input, shape index: {}]   ;;  %s937_s2 = inlined_call_operand.vmem [shape: f32[8,48], index: 2, kind: input, shape index: {}]   ;;  %s938_s3 = inlined_call_operand.vmem [shape: f32[4,1], index: 3, kind: input, shape index: {}]   ;;  %s939_s4 = inlined_call_operand.vmem [shape: f32[4,1], index: 4, kind: input, shape index: {}]   ;;  %s940_s5 = inlined_call_operand.vmem [shape: f32[2,8,256], index: 5, kind: output, shape index: {0}]   ;;  %s941_s6 = inlined_call_operand.vmem [shape: f32[2,8,1], index: 6, kind: output, shape index: {1}]   ;;  %s942_s7 = inlined_call_operand.vmem [shape: f32[2,8,1], index: 7, kind: output, shape index: {2}]  }
   0x1 LB: > { %s715_s3 = sadd.s32 4294967295, %s764_s24   ;;  %p719_p0 = scmp.ge.s32.totalorder %s764_s24, 1  ;;  %s764_s24 = sphi %s812_s24, %s18_s24  }
   0x2   : > { %p242_p1 = scmp.lt.s32.totalorder %s764_s24, 3 }
   0x4   : > { %p243_p2 = pnand %p719_p0, %p242_p1 }
   0x5   : > { %p282_p3 = scmp.lt.s32.totalorder (!%p243_p2), %s715_s3, 1  ;;  %s766_s28 = smov (!%p243_p2), 112   ;;  %v311_v2 = vlaneseq (!%p243_p2)  ;;  %v301_v3 = vld [vmem:[%s935_s0] sm:$0xf] (!%p243_p2)  ;;  %v770_v7 = vmov (!%p243_p2), 0   ;;  %v771_v47 = vmov (!%p243_p2), 0.0  }
   0x6   : > { %246 = sbr.rel (%p243_p2) target bundleno = 645 (0x285), region = 40  ;;  %s767_s29 = smov (!%p243_p2), 16   ;;  %vm302_vm0 = vcmp.eq.s32.totalorder (!%p243_p2), %v301_v3, 0  ;;  %vm303_vm1 = vcmp.eq.s32.totalorder (!%p243_p2), %v301_v3, 15  ;;  %366 = vst [vmem:[#allocation2 + $0x48] sm:$0xf0] (!%p243_p2), %v771_v47  ;;  %578 = vmatprep.mubr.f32.mxu0 (!%p243_p2), %v771_v47 }
   0x7   : > { %s768_s30 = smov (!%p243_p2), 1   ;;  %s769_s8 = smov (!%p243_p2), 127   ;;  %v325_v4 = vshrl.u32 (!%p243_p2), %v311_v2, 7  ;;  %v323_v8 = vsel (!%p243_p2), %vm302_vm0, 1, %v770_v7  ;;  %v344_v9 = vsel (!%p243_p2), %vm303_vm1, 1, %v770_v7  ;;  %v836_v16 = vand.u32 (!%p243_p2), 127, %v311_v2 }
   0x8   : > { %365 = vst [vmem:[#allocation2 + $0x40] sm:$0xf0] (!%p243_p2), %v771_v47  ;;  %vm510_vm14 = vcmask (!%p243_p2), 392192   ;;  %vm590_vm15 = vcmask (!%p243_p2), 7168  }
   0x9   : > { %v326_v5 = vsub.s32 (!%p243_p2), 0, %v325_v4  ;;  %v330_v6 = vsub.s32 (!%p243_p2), 2, %v325_v4  ;;  %v385_v14 = vsub.s32 (!%p243_p2), 1, %v325_v4  ;;  %v389_v15 = vsub.s32 (!%p243_p2), 3, %v325_v4 }
   0xa   : > { %vm320_vm2 = vcmp.lt.s32.totalorder (!%p243_p2), %v836_v16, 112  ;;  %vm313_vm3 = vcmp.lt.s32.totalorder (!%p243_p2), %v836_v16, 16  ;;  %vm373_vm8 = vcmp.lt.s32.totalorder (!%p243_p2), %v836_v16, 1  ;;  %vm380_vm9 = vcmp.lt.s32.totalorder (!%p243_p2), %v836_v16, 127 }
   0xb   : > { %v327_v10 = vrot.slane (!%p243_p2), %v323_v8, %v326_v5  ;;  %v331_v11 = vrot.slane (!%p243_p2), %v323_v8, %v330_v6  ;;  %v348_v12 = vrot.slane (!%p243_p2), %v344_v9, %v326_v5  ;;  %v352_v13 = vrot.slane (!%p243_p2), %v344_v9, %v330_v6 }
   0xc   : > { %v386_v23 = vrot.slane (!%p243_p2), %v323_v8, %v385_v14  ;;  %v390_v24 = vrot.slane (!%p243_p2), %v323_v8, %v389_v15  ;;  %v406_v25 = vrot.slane (!%p243_p2), %v344_v9, %v385_v14  ;;  %v410_v26 = vrot.slane (!%p243_p2), %v344_v9, %v389_v15 }
   0xd   : > { %s948_s3 = smov (!%p282_p3, %s715_s3), 1  ;;  %v335_v17 = vrot.slane %v327_v10, %v326_v5  ;;  %v339_v18 = vrot.slane %v331_v11, %v326_v5  ;;  %v356_v19 = vrot.slane %v348_v12, %v326_v5  ;;  %v360_v20 = vrot.slane %v352_v13, %v326_v5 }
   0xe   : > { %s823_s4 = sshll.u32 %s948_s3, 3  ;;  %v840_v29 = vrot.slane %v386_v23, %v385_v14  ;;  %v398_v30 = vrot.slane %v390_v24, %v385_v14  ;;  %v842_v31 = vrot.slane %v406_v25, %v385_v14  ;;  %v418_v32 = vrot.slane %v410_v26, %v385_v14  ;;  %s730_s13 = sshll.u32 %s948_s3, 4 }
   0xf   : > { %s286_s27 = scalar_lea.vmem %s936_s1, %s823_s4  ;;  %vm340_vm4 = vcmp.eq.s32.totalorder %v335_v17, 1  ;;  %vm341_vm5 = vcmp.eq.s32.totalorder %v339_v18, 1  ;;  %vm361_vm6 = vcmp.eq.s32.totalorder %v356_v19, 1  ;;  %vm362_vm7 = vcmp.eq.s32.totalorder %v360_v20, 1  ;;  %s291_s16 = scalar_lea.vmem %s940_s5, %s730_s13 }
  0x10   : > { %v300_v0 = vld [vmem:[%s286_s27] sm:$0xff]  ;;  %vm399_vm10 = vcmp.eq.s32.totalorder %v840_v29, 1  ;;  %vm419_vm11 = vcmp.eq.s32.totalorder %v842_v31, 1  ;;  %vm859_vm12 = vcmp.eq.s32.totalorder %v398_v30, 1  ;;  %vm863_vm13 = vcmp.eq.s32.totalorder %v418_v32, 1  ;;  %s295_s19 = scalar_lea.vmem %s941_s6, %s823_s4  ;;  %s299_s22 = scalar_lea.vmem %s942_s7, %s823_s4 }
  0x11   : > { %316 = vrot.lane.b32.xlu1 %v300_v0, %s766_s28  ;;  %459 = vst [vmem:[#allocation2 + $0x20] sm:$0xf] %v300_v0  ;;  %307 = vrot.lane.b32.xlu0 %v300_v0, %s767_s29  ;;  %v305_v1 = vcombine.high %v300_v0, %v300_v0 }
  0x13   : > { %460 = vst [vmem:[#allocation2 + $0x28] sm:$0xf] %v305_v1 }
  0x15   : > { %318 = vrot.lane.b32.xlu1 %v305_v1, %s766_s28  ;;  %309 = vrot.lane.b32.xlu0 %v305_v1, %s767_s29 }
  0x19   : > { %437 = vrot.lane.b32.xlu1 %v305_v1, %s768_s30  ;;  %435 = vrot.lane.b32.xlu0 %v300_v0, %s768_s30 }
  0x1d   : > { %443 = vrot.lane.b32.xlu1 %v305_v1, %s769_s8  ;;  %441 = vrot.lane.b32.xlu0 %v300_v0, %s769_s8 }
  0x83   : > { %v317_v21 = vpop.permute.xlu1 %316  ;;  %v308_v22 = vpop.permute.xlu0 %307 }
  0x87   : > { %v319_v27 = vpop.permute.xlu1 %318  ;;  %v310_v28 = vpop.permute.xlu0 %309 }
  0x88   : > { %v321_v33 = vsel %vm320_vm2, %v317_v21, %v319_v27  ;;  %v322_v34 = vsel %vm320_vm2, %v319_v27, %v317_v21  ;;  %v314_v35 = vsel %vm313_vm3, %v308_v22, %v310_v28  ;;  %v315_v36 = vsel %vm313_vm3, %v310_v28, %v308_v22 }
  0x89   : > { %v342_v37 = vsel %vm340_vm4, %v321_v33, %v315_v36  ;;  %v343_v38 = vsel %vm341_vm5, %v322_v34, %v314_v35  ;;  %v363_v39 = vsel %vm361_vm6, %v315_v36, %v321_v33  ;;  %v364_v40 = vsel %vm362_vm7, %v314_v35, %v322_v34 }
  0x8a   : > { %369 = vrot.lane.b32.xlu0 %v342_v37, %s768_s30  ;;  %v427_v41 = vrot.slane %v342_v37, 4  ;;  %371 = vrot.lane.b32.xlu1 %v343_v38, %s768_s30  ;;  %v428_v42 = vrot.slane %v343_v38, 4  ;;  %v489_v43 = vrot.slane %v363_v39, 4  ;;  %v490_v44 = vrot.slane %v364_v40, 4 }
  0x8b   : > { %v438_v45 = vpop.permute.xlu1 %437  ;;  %v436_v46 = vpop.permute.xlu0 %435 }
  0x8c   : > { %431 = vst [vmem:[#allocation2] sm:$0xf0] %v427_v41  ;;  %432 = vst [vmem:[#allocation2 + $0x8] sm:$0xf0] %v428_v42  ;;  %v439_v48 = vsel %vm373_vm8, %v436_v46, %v438_v45  ;;  %v440_v49 = vsel %vm373_vm8, %v438_v45, %v436_v46 }
  0x8d   : > { %493 = vst [vmem:[#allocation2 + $0x30] sm:$0xf0] %v489_v43  ;;  %494 = vst [vmem:[#allocation2 + $0x38] sm:$0xf0] %v490_v44 }
  0x8e   : > { %376 = vrot.lane.b32.xlu0 %v342_v37, %s769_s8  ;;  %378 = vrot.lane.b32.xlu1 %v343_v38, %s769_s8 }
  0x8f   : > { %v444_v52 = vpop.permute.xlu1 %443  ;;  %v442_v53 = vpop.permute.xlu0 %441 }
  0x90   : > { %v445_v54 = vsel %vm380_vm9, %v442_v53, %v444_v52  ;;  %v446_v55 = vsel %vm380_vm9, %v444_v52, %v442_v53 }
  0x91   : > { %v447_v56 = vsel %vm399_vm10, %v445_v54, %v440_v49  ;;  %v448_v57 = vsel %vm859_vm12, %v446_v55, %v439_v48  ;;  %v449_v58 = vsel %vm419_vm11, %v440_v49, %v445_v54  ;;  %v450_v59 = vsel %vm863_vm13, %v439_v48, %v446_v55 }
  0x92   : > { %469 = vrot.lane.b32.xlu0 %v363_v39, %s768_s30  ;;  %471 = vrot.lane.b32.xlu1 %v364_v40, %s768_s30  ;;  %v453_v60 = vrot.slane %v447_v56, 4  ;;  %v454_v61 = vrot.slane %v448_v57, 4  ;;  %v463_v62 = vrot.slane %v449_v58, 4  ;;  %v464_v63 = vrot.slane %v450_v59, 4 }
  0x94   : > { %457 = vst [vmem:[#allocation2 + $0x10] sm:$0xf0] %v453_v60  ;;  %458 = vst [vmem:[#allocation2 + $0x18] sm:$0xf0] %v454_v61 }
  0x95   : > { %467 = vst [vmem:[#allocation2 + $0x20] sm:$0xf0] %v463_v62  ;;  %468 = vst [vmem:[#allocation2 + $0x28] sm:$0xf0] %v464_v63 }
  0x96   : > { %475 = vrot.lane.b32.xlu0 %v363_v39, %s769_s8  ;;  %477 = vrot.lane.b32.xlu1 %v364_v40, %s769_s8  ;;  %v497_v40 = vld [vmem:[%s937_s2] sm:$0xff] }
  0x9c   : > { %v503_v30 = vld [vmem:[#allocation2 + $0x28] sm:$0xff]  ;;  %v502_v32 = vld [vmem:[#allocation2 + $0x20] sm:$0xff] }
  0xfc   : > { %v372_v0 = vpop.permute.xlu1 %371  ;;  %v370_v1 = vpop.permute.xlu0 %369 }
  0xfd   : > { %v374_v4 = vsel %vm373_vm8, %v370_v1, %v372_v0  ;;  %v375_v5 = vsel %vm373_vm8, %v372_v0, %v370_v1 }
 0x100   : > { %v379_v2 = vpop.permute.xlu1 %378  ;;  %v377_v3 = vpop.permute.xlu0 %376 }
 0x101   : > { %v381_v6 = vsel %vm380_vm9, %v377_v3, %v379_v2  ;;  %v382_v7 = vsel %vm380_vm9, %v379_v2, %v377_v3 }
 0x102   : > { %v401_v8 = vsel %vm399_vm10, %v381_v6, %v375_v5  ;;  %v402_v9 = vsel %vm859_vm12, %v382_v7, %v374_v4  ;;  %v421_v10 = vsel %vm419_vm11, %v375_v5, %v381_v6  ;;  %v422_v11 = vsel %vm863_vm13, %v374_v4, %v382_v7 }
 0x103   : > { %423 = vst [vmem:[#allocation2] sm:$0xf] %v401_v8  ;;  %424 = vst [vmem:[#allocation2 + $0x8] sm:$0xf] %v402_v9 }
 0x104   : > { %433 = vst [vmem:[#allocation2 + $0x10] sm:$0xf] %v421_v10  ;;  %434 = vst [vmem:[#allocation2 + $0x18] sm:$0xf] %v422_v11  ;;  %v472_v12 = vpop.permute.xlu1 %471  ;;  %v470_v13 = vpop.permute.xlu0 %469 }
 0x105   : > { %v473_v17 = vsel %vm373_vm8, %v470_v13, %v472_v12  ;;  %v474_v18 = vsel %vm373_vm8, %v472_v12, %v470_v13 }
 0x108   : > { %v478_v14 = vpop.permute.xlu1 %477  ;;  %v476_v15 = vpop.permute.xlu0 %475 }
 0x109   : > { %v479_v19 = vsel %vm380_vm9, %v476_v15, %v478_v14  ;;  %v480_v20 = vsel %vm380_vm9, %v478_v14, %v476_v15 }
 0x10a   : > { %v481_v21 = vsel %vm399_vm10, %v479_v19, %v474_v18  ;;  %v482_v22 = vsel %vm859_vm12, %v480_v20, %v473_v17  ;;  %v483_v23 = vsel %vm419_vm11, %v474_v18, %v479_v19  ;;  %v484_v24 = vsel %vm863_vm13, %v473_v17, %v480_v20  ;;  %v499_v25 = vld [vmem:[#allocation2 + $0x8] sm:$0xff]  ;;  %v498_v27 = vld [vmem:[#allocation2] sm:$0xff] }
 0x10b   : > { %v501_v26 = vld [vmem:[#allocation2 + $0x18] sm:$0xff]  ;;  %485 = vst [vmem:[#allocation2 + $0x30] sm:$0xf] %v481_v21  ;;  %486 = vst [vmem:[#allocation2 + $0x38] sm:$0xf] %v482_v22  ;;  %v500_v28 = vld [vmem:[#allocation2 + $0x10] sm:$0xff] }
 0x10c   : > { %495 = vst [vmem:[#allocation2 + $0x40] sm:$0xf] %v483_v23  ;;  %496 = vst [vmem:[#allocation2 + $0x48] sm:$0xf] %v484_v24  ;;  %v731_v16 = vpack.c.bf16 %v501_v26, %v499_v25  ;;  %v733_v29 = vpack.c.bf16 %v500_v28, %v498_v27 }
 0x10e   : > { %732 = vmatprep.subr.bf16.mxu0 %v731_v16 }
 0x10f   : > { %734 = vmatpush1.bf16.msra.mxu0 %v733_v29 }
 0x112   : > { %v505_v31 = vld [vmem:[#allocation2 + $0x38] sm:$0xff]  ;;  %v504_v33 = vld [vmem:[#allocation2 + $0x30] sm:$0xff] }
 0x113   : > { %v507_v34 = vld [vmem:[#allocation2 + $0x48] sm:$0xff]  ;;  %v735_v35 = vpack.c.bf16 %v505_v31, %v503_v30  ;;  %v737_v36 = vpack.c.bf16 %v504_v33, %v502_v32  ;;  %v506_v38 = vld [vmem:[#allocation2 + $0x40] sm:$0xff] }
 0x114   : > { %v739_v37 = vpack.c.bf16 %v771_v47, %v507_v34  ;;  %v741_v39 = vpack.c.bf16 %v771_v47, %v506_v38 }
 0x115   : > { %736 = vmatprep.subr.bf16.mxu0 %v735_v35 }
 0x116   : > { %738 = vmatpush1.bf16.msra.mxu0 %v737_v36 }
 0x117   : > { %740 = vmatprep.subr.bf16.mxu0 %v739_v37 }
 0x11a   : > { %742 = vmatpush1.bf16.msra.mxu0 %v741_v39 }
 0x11d   : > { %726 = vmatmul.mubr.msk.f32.vlgmr.msra.gmra.mrb[0].mxu0 %vm510_vm14, %v497_v40 }
 0x1f0   : > { %v580_v41 = vpop.f32.mrb[0].mxu0 }
 0x1f1   : > { %v582_v42 = vpop.f32.mrb[1].mxu0  ;;  %585 = vst [vmem:[%s291_s16] sm:$0xff] %v580_v41  ;;  %v592_v43 = vmul.f32 %v580_v41, %v580_v41 }
 0x1f2   : > { %586 = vst [vmem:[%s291_s16 + $0x8] sm:$0xff] %v582_v42  ;;  %v593_v44 = vmul.f32 %v582_v42, %v582_v42  ;;  %v587_v45 = vadd.f32 %v582_v42, %v580_v41 }
 0x1f4   : > { %588 = vadd.xlane.f32.xlu0 %v587_v45  ;;  %v594_v46 = vadd.f32 %v593_v44, %v592_v43 }
 0x1f6   : > { %595 = vadd.xlane.f32.xlu1 %v594_v46 }
 0x281   : > { %v589_v47 = vpop.xlane.xlu0 %588 }
 0x282   : > { %591 = vst.msk [vmem:[%s295_s19] sm:$0xff] %vm590_vm15, %v589_v47 }
 0x283   : > { %v596_v48 = vpop.xlane.xlu1 %595 }
 0x284   : > { %597 = vst.msk [vmem:[%s299_s22] sm:$0xff] %vm590_vm15, %v596_v48 }
 0x285 PF: > { %s18_s24 = sadd.s32 1, %s764_s24  }
 0x286   : > { %p15_p4 = scmp.ge.s32.totalorder %s18_s24, 4  }
 0x288   :  { %17 = sbr.rel (!%p15_p4) target bundleno = 1 (0x1), region = 94 }

// kernel: downsample_forward.5
= control target key start
LH: loop header
LB: loop body
LE: loop exit
PB: predicated region body
PF: predicated region fallthrough
CT: control target
= control target key end

     0   :  { %s838_s24 = smov 0   ;;  %s963_s0 = inlined_call_operand.vmem [shape: s32[2,256], index: 0, kind: input, shape index: {}]   ;;  %s964_s1 = inlined_call_operand.vmem [shape: f32[2,8,256], index: 1, kind: input, shape index: {}]   ;;  %s965_s2 = inlined_call_operand.vmem [shape: f32[8,80], index: 2, kind: input, shape index: {}]   ;;  %s966_s3 = inlined_call_operand.vmem [shape: f32[8,1], index: 3, kind: input, shape index: {}]   ;;  %s967_s4 = inlined_call_operand.vmem [shape: f32[8,1], index: 4, kind: input, shape index: {}]   ;;  %s968_s5 = inlined_call_operand.vmem [shape: f32[2,8,256], index: 5, kind: output, shape index: {0}]   ;;  %s969_s6 = inlined_call_operand.vmem [shape: f32[2,8,1], index: 6, kind: output, shape index: {1}]   ;;  %s970_s7 = inlined_call_operand.vmem [shape: f32[2,8,1], index: 7, kind: output, shape index: {2}]  }
   0x1 LB: > { %s717_s25 = sadd.s32 4294967295, %s790_s24   ;;  %p721_p0 = scmp.ge.s32.totalorder %s790_s24, 1  ;;  %s790_s24 = sphi %s838_s24, %s18_s24  }
   0x2   : > { %p242_p1 = scmp.lt.s32.totalorder %s790_s24, 3 }
   0x4   : > { %p243_p2 = pnand %p721_p0, %p242_p1 }
   0x5   : > { %v302_v0 = vld [vmem:[%s966_s3] sm:$0xff] (!%p243_p2)  ;;  %v792_v1 = vmov (!%p243_p2), 0   ;;  %p282_p3 = scmp.lt.s32.totalorder (!%p243_p2), %s717_s25, 1  ;;  %s793_s11 = smov (!%p243_p2), 112   ;;  %v331_v15 = vlaneseq (!%p243_p2)  ;;  %v797_v45 = vmov (!%p243_p2), 0.0  }
   0x6   : > { %246 = sbr.rel (%p243_p2) target bundleno = 771 (0x303), region = 40  ;;  %763 = vset.pattern.permute.xlu0 (!%p243_p2), %v792_v1  ;;  %v310_v2 = vld [vmem:[%s967_s4] sm:$0xff] (!%p243_p2)  ;;  %s794_s12 = smov (!%p243_p2), 16   ;;  %580 = vmatprep.mubr.f32.mxu0 (!%p243_p2), %v797_v45 }
   0x7   : > { %305 = vperm.xlu0 (!%p243_p2), %763, %v302_v0   ;;  %v324_v16 = vld [vmem:[%s963_s0] sm:$0xf] (!%p243_p2)  ;;  %v345_v17 = vshrl.u32 (!%p243_p2), %v331_v15, 7  ;;  %v871_v24 = vand.u32 (!%p243_p2), 127, %v331_v15  ;;  %s795_s15 = smov (!%p243_p2), 127   ;;  %s796_s16 = smov (!%p243_p2), 1  }
   0x8   : > { %vm325_vm2 = vcmp.eq.s32.totalorder (!%p243_p2), %v324_v16, 0  ;;  %vm326_vm3 = vcmp.eq.s32.totalorder (!%p243_p2), %v324_v16, 15 }
   0x9   : > { %v346_v18 = vsub.s32 (!%p243_p2), 0, %v345_v17  ;;  %v350_v19 = vsub.s32 (!%p243_p2), 2, %v345_v17  ;;  %v343_v20 = vsel (!%p243_p2), %vm325_vm2, 1, %v792_v1  ;;  %v364_v28 = vsel (!%p243_p2), %vm326_vm3, 1, %v792_v1 }
   0xa   : > { %vm333_vm4 = vcmp.lt.s32.totalorder (!%p243_p2), %v871_v24, 16  ;;  %vm340_vm5 = vcmp.lt.s32.totalorder (!%p243_p2), %v871_v24, 112  ;;  %v403_v46 = vsub.s32 (!%p243_p2), 1, %v345_v17  ;;  %v407_v47 = vsub.s32 (!%p243_p2), 3, %v345_v17 }
   0xb   : > { %313 = vperm.xlu0 (!%p243_p2), %763, %v310_v2   ;;  %v347_v21 = vrot.slane (!%p243_p2), %v343_v20, %v346_v18  ;;  %v351_v22 = vrot.slane (!%p243_p2), %v343_v20, %v350_v19  ;;  %v372_v31 = vrot.slane (!%p243_p2), %v364_v28, %v350_v19  ;;  %v368_v32 = vrot.slane (!%p243_p2), %v364_v28, %v346_v18 }
   0xc   : > { %v408_v48 = vrot.slane (!%p243_p2), %v343_v20, %v407_v47  ;;  %v404_v49 = vrot.slane (!%p243_p2), %v343_v20, %v403_v46  ;;  %v424_v50 = vrot.slane (!%p243_p2), %v364_v28, %v403_v46  ;;  %v428_v53 = vrot.slane (!%p243_p2), %v364_v28, %v407_v47 }
   0xd   : > { %s976_s25 = smov (!%p282_p3, %s717_s25), 1  ;;  %v355_v25 = vrot.slane %v347_v21, %v346_v18  ;;  %v359_v26 = vrot.slane %v351_v22, %v346_v18  ;;  %v380_v40 = vrot.slane %v372_v31, %v346_v18  ;;  %v376_v41 = vrot.slane %v368_v32, %v346_v18 }
   0xe   : > { %s731_s30 = sshll.u32 %s976_s25, 4  ;;  %v416_v51 = vrot.slane %v408_v48, %v403_v46  ;;  %v412_v52 = vrot.slane %v404_v49, %v403_v46  ;;  %vm398_vm10 = vcmp.lt.s32.totalorder %v871_v24, 127  ;;  %vm391_vm11 = vcmp.lt.s32.totalorder %v871_v24, 1  ;;  %v491_v24 = vld [vmem:[%s965_s2] sm:$0xff]  ;;  %s726_s22 = sshll.u32 %s976_s25, 3 }
   0xf   : > { %s286_s10 = scalar_lea.vmem %s964_s1, %s731_s30  ;;  %vm360_vm6 = vcmp.eq.s32.totalorder %v355_v25, 1  ;;  %vm361_vm7 = vcmp.eq.s32.totalorder %v359_v26, 1  ;;  %vm382_vm8 = vcmp.eq.s32.totalorder %v380_v40, 1  ;;  %vm381_vm9 = vcmp.eq.s32.totalorder %v376_v41, 1  ;;  %s291_s21 = scalar_lea.vmem %s968_s5, %s731_s30 }
  0x10   : > { %v300_v4 = vld [vmem:[%s286_s10] sm:$0xff]  ;;  %v301_v5 = vld [vmem:[%s286_s10 + $0x8] sm:$0xff]  ;;  %vm890_vm12 = vcmp.eq.s32.totalorder %v416_v51, 1  ;;  %vm417_vm13 = vcmp.eq.s32.totalorder %v412_v52, 1  ;;  %v436_v57 = vrot.slane %v428_v53, %v403_v46  ;;  %v432_v58 = vrot.slane %v424_v50, %v403_v46  ;;  %s295_s27 = scalar_lea.vmem %s969_s6, %s726_s22  ;;  %s299_s30 = scalar_lea.vmem %s970_s7, %s726_s22 }
  0x12   : > { %vm905_vm14 = vcmp.eq.s32.totalorder %v436_v57, 1  ;;  %vm437_vm15 = vcmp.eq.s32.totalorder %v432_v58, 1 }
  0x86   : > { %v306_v3 = vpop.permute.xlu0 %305 }
  0x87   : > { %v308_v6 = vmul.f32 %v306_v3, %v300_v4  ;;  %v309_v7 = vmul.f32 %v306_v3, %v301_v5 }
  0x8a   : > { %v314_v8 = vpop.permute.xlu0 %313 }
  0x8b   : > { %v316_v9 = vadd.f32 %v314_v8, %v308_v6  ;;  %v317_v10 = vadd.f32 %v314_v8, %v309_v7 }
  0x8d   : > { %vm318_vm0 = vcmp.ge.f32.partialorder %v316_v9, 0.0  ;;  %v320_v11 = vmul.f32 0.2, %v316_v9  ;;  %v321_v12 = vmul.f32 0.2, %v317_v10  ;;  %vm319_vm1 = vcmp.ge.f32.partialorder %v317_v10, 0.0 }
  0x8f   : > { %v860_v13 = vsel %vm318_vm0, %v316_v9, %v320_v11  ;;  %v864_v14 = vsel %vm319_vm1, %v317_v10, %v321_v12  ;;  %vm512_vm0 = vcmask 654336   ;;  %vm592_vm1 = vcmask 7168  }
  0x90   : > { %336 = vrot.lane.b32.xlu0 %v860_v13, %s793_s11  ;;  %327 = vrot.lane.b32.xlu1 %v860_v13, %s794_s12  ;;  %v779_v42 = vpack.i.bf16 %v864_v14, %v860_v13 }
  0x94   : > { %329 = vrot.lane.b32.xlu1 %v864_v14, %s794_s12 }
  0x98   : > { %338 = vrot.lane.b32.xlu1 %v864_v14, %s793_s11 }
 0x102   : > { %v328_v23 = vpop.permute.xlu1 %327  ;;  %v337_v29 = vpop.permute.xlu0 %336 }
 0x106   : > { %v330_v27 = vpop.permute.xlu1 %329 }
 0x107   : > { %v334_v33 = vsel %vm333_vm4, %v328_v23, %v330_v27  ;;  %v335_v34 = vsel %vm333_vm4, %v330_v27, %v328_v23 }
 0x10a   : > { %v339_v30 = vpop.permute.xlu1 %338 }
 0x10b   : > { %v341_v35 = vsel %vm340_vm5, %v337_v29, %v339_v30  ;;  %v342_v36 = vsel %vm340_vm5, %v339_v30, %v337_v29 }
 0x10c   : > { %v875_v37 = vsel %vm360_vm6, %v341_v35, %v335_v34  ;;  %v363_v38 = vsel %vm361_vm7, %v342_v36, %v334_v33  ;;  %v880_v43 = vsel %vm382_vm8, %v334_v33, %v342_v36  ;;  %v882_v44 = vsel %vm381_vm9, %v335_v34, %v341_v35 }
 0x10d   : > { %v774_v39 = vpack.i.bf16 %v363_v38, %v875_v37 }
 0x10f   : > { %775 = vrot.lane.b32.xlu1 %v774_v39, %s795_s15  ;;  %765 = vrot.lane.b32.xlu0 %v774_v39, %s796_s16 }
 0x113   : > { %780 = vrot.lane.b32.xlu1 %v779_v42, %s795_s15  ;;  %770 = vrot.lane.b32.xlu0 %v779_v42, %s796_s16 }
 0x117   : > { %471 = vrot.lane.b32.xlu1 %v880_v43, %s796_s16  ;;  %469 = vrot.lane.b32.xlu0 %v882_v44, %s796_s16 }
 0x11b   : > { %477 = vrot.lane.b32.xlu1 %v880_v43, %s795_s15  ;;  %475 = vrot.lane.b32.xlu0 %v882_v44, %s795_s15 }
 0x181   : > { %v776_v54 = vpop.permute.xlu1 %775  ;;  %v766_v55 = vpop.permute.xlu0 %765 }
 0x182   : > { %v778_v59 = vunpack.i.h.bf16 %v776_v54  ;;  %v777_v60 = vunpack.i.l.bf16 %v776_v54  ;;  %v768_v61 = vunpack.i.h.bf16 %v766_v55  ;;  %v767_v62 = vunpack.i.l.bf16 %v766_v55 }
 0x184   : > { %v392_v63 = vsel %vm391_vm11, %v767_v62, %v768_v61  ;;  %v400_v0 = vsel %vm398_vm10, %v778_v59, %v777_v60  ;;  %v393_v1 = vsel %vm391_vm11, %v768_v61, %v767_v62  ;;  %v399_v2 = vsel %vm398_vm10, %v777_v60, %v778_v59 }
 0x185   : > { %v781_v3 = vpop.permute.xlu1 %780  ;;  %v771_v4 = vpop.permute.xlu0 %770  ;;  %v420_v5 = vsel %vm890_vm12, %v400_v0, %v392_v63  ;;  %v419_v6 = vsel %vm417_vm13, %v399_v2, %v393_v1  ;;  %v440_v22 = vsel %vm905_vm14, %v392_v63, %v400_v0  ;;  %v439_v25 = vsel %vm437_vm15, %v393_v1, %v399_v2 }
 0x186   : > { %v783_v8 = vunpack.i.h.bf16 %v781_v3  ;;  %v782_v9 = vunpack.i.l.bf16 %v781_v3  ;;  %v773_v10 = vunpack.i.h.bf16 %v771_v4  ;;  %v772_v11 = vunpack.i.l.bf16 %v771_v4 }
 0x187   : > { %v733_v12 = vpack.c.bf16 %v363_v38, %v420_v5  ;;  %v735_v15 = vpack.c.bf16 %v875_v37, %v419_v6 }
 0x188   : > { %v457_v16 = vsel %vm398_vm10, %v782_v9, %v783_v8  ;;  %v458_v17 = vsel %vm398_vm10, %v783_v8, %v782_v9  ;;  %v451_v18 = vsel %vm391_vm11, %v772_v11, %v773_v10  ;;  %v452_v19 = vsel %vm391_vm11, %v773_v10, %v772_v11 }
 0x189   : > { %734 = vmatprep.subr.bf16.mxu0 %v733_v12  ;;  %v472_v20 = vpop.permute.xlu1 %471  ;;  %v470_v21 = vpop.permute.xlu0 %469  ;;  %v460_v23 = vsel %vm890_vm12, %v458_v17, %v451_v18  ;;  %v459_v26 = vsel %vm417_vm13, %v457_v16, %v452_v19  ;;  %v462_v29 = vsel %vm905_vm14, %v451_v18, %v458_v17  ;;  %v461_v33 = vsel %vm437_vm15, %v452_v19, %v457_v16 }
 0x18a   : > { %736 = vmatpush1.bf16.msra.mxu0 %v735_v15  ;;  %v737_v27 = vpack.c.bf16 %v460_v23, %v440_v22  ;;  %v739_v28 = vpack.c.bf16 %v459_v26, %v439_v25  ;;  %v741_v32 = vpack.c.bf16 %v462_v29, %v864_v14  ;;  %v473_v34 = vsel %vm391_vm11, %v470_v21, %v472_v20 }
 0x18b   : > { %v474_v14 = vsel %vm391_vm11, %v472_v20, %v470_v21  ;;  %v743_v38 = vpack.c.bf16 %v461_v33, %v860_v13 }
 0x18c   : > { %738 = vmatprep.subr.bf16.mxu0 %v737_v27 }
 0x18d   : > { %v478_v30 = vpop.permute.xlu1 %477  ;;  %v476_v31 = vpop.permute.xlu0 %475 }
 0x18e   : > { %v479_v35 = vsel %vm398_vm10, %v476_v31, %v478_v30  ;;  %v480_v36 = vsel %vm398_vm10, %v478_v30, %v476_v31  ;;  %740 = vmatpush1.bf16.msra.mxu0 %v739_v28 }
 0x18f   : > { %v482_v37 = vsel %vm890_vm12, %v480_v36, %v473_v34  ;;  %742 = vmatprep.subr.bf16.mxu0 %v741_v32  ;;  %v481_v40 = vsel %vm417_vm13, %v479_v35, %v474_v14  ;;  %v484_v42 = vsel %vm905_vm14, %v473_v34, %v480_v36  ;;  %v483_v13 = vsel %vm437_vm15, %v474_v14, %v479_v35 }
 0x190   : > { %v745_v39 = vpack.c.bf16 %v880_v43, %v482_v37  ;;  %v747_v41 = vpack.c.bf16 %v882_v44, %v481_v40 }
 0x192   : > { %744 = vmatpush1.bf16.msra.mxu0 %v743_v38 }
 0x193   : > { %746 = vmatprep.subr.bf16.mxu0 %v745_v39 }
 0x196   : > { %748 = vmatpush1.bf16.msra.mxu0 %v747_v41 }
 0x197   : > { %532 = vmatprep.subr.mxu0 %v484_v42 }
 0x19a   : > { %533 = vmatpush1.msra.mxu0 %v483_v13 }
 0x19b   : > { %728 = vmatmul.mubr.msk.f32.vlgmr.msra.gmra.mrb[0].mxu0 %vm512_vm0, %v491_v24 }
 0x26e   : > { %v582_v43 = vpop.f32.mrb[0].mxu0 }
 0x26f   : > { %v584_v44 = vpop.f32.mrb[1].mxu0  ;;  %587 = vst [vmem:[%s291_s21] sm:$0xff] %v582_v43  ;;  %v594_v45 = vmul.f32 %v582_v43, %v582_v43 }
 0x270   : > { %588 = vst [vmem:[%s291_s21 + $0x8] sm:$0xff] %v584_v44  ;;  %v595_v46 = vmul.f32 %v584_v44, %v584_v44  ;;  %v589_v47 = vadd.f32 %v584_v44, %v582_v43 }
 0x272   : > { %590 = vadd.xlane.f32.xlu0 %v589_v47  ;;  %v596_v48 = vadd.f32 %v595_v46, %v594_v45 }
 0x274   : > { %597 = vadd.xlane.f32.xlu1 %v596_v48 }
 0x2ff   : > { %v591_v49 = vpop.xlane.xlu0 %590 }
 0x300   : > { %593 = vst.msk [vmem:[%s295_s27] sm:$0xff] %vm592_vm1, %v591_v49 }
 0x301   : > { %v598_v50 = vpop.xlane.xlu1 %597 }
 0x302   : > { %599 = vst.msk [vmem:[%s299_s30] sm:$0xff] %vm592_vm1, %v598_v50 }
 0x303 PF: > { %s18_s24 = sadd.s32 1, %s790_s24  }
 0x304   : > { %p15_p4 = scmp.ge.s32.totalorder %s18_s24, 4  }
 0x306   :  { %17 = sbr.rel (!%p15_p4) target bundleno = 1 (0x1), region = 94 }

</bundles_post_ra>
